<compile_context>
chip_gen: v5e
topology: v5e:2x2
jax: 0.10.0
libtpu: 0.0.40
codegen_flags: <defaults>
</compile_context>

<pallas_src>
import math

import jax
import jax.numpy as jnp
from jax.experimental import pallas as pl
from jax.experimental.pallas import tpu as pltpu


# -----------------------------------------------------------------------------
# Fused kernel: pool -> conv1/BN/Hardswish -> heads/sigmoid -> apply, NB batches
# per grid step.  Block layouts:
#   x, out       : (NB, C, D, H*W)   (lane dim = H*W, sublane dim = D)
#   onehot (exp) : mh (H, HW), mw (W, HW)        mh[h, h*W + w] = 1
#   onehot (pool): mh_t (HW, H), mw_t (HW, W)    (transposed in the wrapper, not in-kernel)
# -----------------------------------------------------------------------------
def coordatt_fused_kernel(x_ref, mh_ref, mw_ref, mh_t_ref, mw_t_ref,
                          w1_ref, b1_ref, scale_ref, shift_ref,
                          wd_ref, bd_ref, wh_ref, bh_ref, ww_ref, bw_ref,
                          out_ref):
    NB, C, D, HW = x_ref.shape
    H = mh_ref.shape[0]
    W = mw_ref.shape[0]
    HIGH = jax.lax.Precision.HIGHEST

    def mm(a, b):
        # Small MXU matmul, f32 accumulation; HIGHEST keeps the f32 pass decomposition
        # accurate for pooled sums and exact-selection (one-hot) products.
        return jnp.dot(a, b, preferred_element_type=jnp.float32, precision=HIGH)

    # Constant operands: read once per grid step (hoisted out of the NB loop).
    mh, mw = mh_ref[...], mw_ref[...]            # (H, HW), (W, HW)  expansion orientation
    mh_t, mw_t = mh_t_ref[...], mw_t_ref[...]    # (HW, H), (HW, W)  pooling orientation
    w1, b1 = w1_ref[...], b1_ref[...]
    scale, shift = scale_ref[...], shift_ref[...]
    wd, bd = wd_ref[...], bd_ref[...]
    wh, bh = wh_ref[...], bh_ref[...]
    ww, bw = ww_ref[...], bw_ref[...]

    def branch(p, w2, b2):
        # conv1 (1x1x1) + BN(eval) + Hardswish + head conv + sigmoid.
        # All ops are per-position, so per-branch == concat -> conv1 -> split (eval mode).
        y = mm(w1, p) + b1
        y = y * scale + shift
        y = y * jnp.clip(y + 3.0, 0.0, 6.0) * (1.0 / 6.0)       # Hardswish
        return jax.nn.sigmoid(mm(w2, y) + b2)

    for i in range(NB):                          # static unroll; NB is small (wrapper-chosen)
        x = x_ref[i].astype(jnp.float32)         # (C, D, HW); f32 accumulation for pools

        # ---- pooling: one pass over x; the D-reduction is shared by the H/W pools ----
        pd = jnp.sum(x, axis=2) * (1.0 / HW)     # (C, D)   lane reduction  (pool over H,W)
        s = jnp.sum(x, axis=1)                   # (C, HW)  shared D-reduction
        ph = mm(s, mh_t) * (1.0 / (D * W))       # (C, H)   MXU segmented pool (over D,W)
        pw = mm(s, mw_t) * (1.0 / (D * H))       # (C, W)   MXU segmented pool (over D,H)

        # ---- squeeze/excite branches ----
        a_d = branch(pd, wd, bd)                 # (C, D)
        a_h = branch(ph, wh, bh)                 # (C, H)
        a_w = branch(pw, ww, bw)                 # (C, W)

        # ---- gate expansion on the MXU (exact: one nonzero per HW column) ----
        gate_hw = mm(a_h, mh) * mm(a_w, mw)      # (C, HW), built once per batch

        # ---- apply: exactly 2 multiplies / element on the mem-bound pass ----
        out_ref[i] = ((x * a_d[:, :, None]) * gate_hw[:, None, :]).astype(out_ref.dtype)


# -----------------------------------------------------------------------------
# Wrapper
# -----------------------------------------------------------------------------
def coord_att_3d(x, params):
    N, C, D, H, W = x.shape
    HW = H * W
    MIP = params["w1"].shape[0]

    # Lane-dense layout: trailing dims are contiguous, so this reshape is free.
    x2 = x.reshape(N, C, D, HW)

    # One-hot selection matrices, built once outside the kernel, in both orientations
    # so the kernel never emits a transpose.
    hw_idx = jnp.arange(HW, dtype=jnp.int32)
    onehot_h = (hw_idx[None, :] // W ==
                jnp.arange(H, dtype=jnp.int32)[:, None]).astype(jnp.float32)   # (H, HW)
    onehot_w = (hw_idx[None, :] % W ==
                jnp.arange(W, dtype=jnp.int32)[:, None]).astype(jnp.float32)   # (W, HW)
    onehot_h_t = onehot_h.T                                                    # (HW, H)
    onehot_w_t = onehot_w.T                                                    # (HW, W)

    # Batch coarsening: pack several batches per grid step when per-batch blocks are tiny,
    # but keep >= 2 grid steps so both v7x TensorCores / the pipeline stay busy.
    per_batch_bytes = C * D * HW * x.dtype.itemsize
    NB = 1
    if N > 1:
        target = 2 << 20
        for cand in range(min(N, 8), 1, -1):
            if N % cand == 0 and N // cand >= 2 and cand * per_batch_bytes <= target:
                NB = cand
                break
    grid = (N // NB,)

    consts = (onehot_h, onehot_w, onehot_h_t, onehot_w_t,
              params["w1"], params["b1"], params["scale"], params["shift"],
              params["wd"], params["bd"], params["wh"], params["bh"],
              params["ww"], params["bw"])
    const_bytes = sum(int(a.size) * a.dtype.itemsize for a in consts)

    # Generation-aware VMEM budget: in/out blocks (double-buffered) + constant operands
    # (double-buffered) + f32 intermediate headroom + compiler scratch slack, capped at
    # 80% of the physical per-core VMEM (leaves headroom on v7x, uses ~102 MiB on v5e/v6e).
    try:
        vmem_cap = int(pltpu.get_tpu_info().vmem_capacity_bytes)
    except Exception:  # conservative default (v7x per-core size)
        vmem_cap = 64 << 20
    block_bytes = NB * per_batch_bytes
    need = (4 * block_bytes                      # x + out, double-buffered
            + 2 * const_bytes                    # constant operands, double-buffered
            + 4 * NB * C * D * HW * 4            # f32 in-kernel intermediates headroom
            + (8 << 20))                         # compiler-internal scratch slack
    vmem_limit = int(min(max(need, 32 << 20), int(0.80 * vmem_cap)))

    def const(shape):
        return pl.BlockSpec(shape, lambda n: (0,) * len(shape))

    out = pl.pallas_call(
        coordatt_fused_kernel,
        grid=grid,
        in_specs=[
            pl.BlockSpec((NB, C, D, HW), lambda n: (n, 0, 0, 0)),  # x
            const((H, HW)), const((W, HW)),                        # one-hot (expansion)
            const((HW, H)), const((HW, W)),                        # one-hot (pooling)
            const((MIP, C)), const((MIP, 1)),                      # conv1 weight / bias
            const((MIP, 1)), const((MIP, 1)),                      # bn scale / shift
            const((C, MIP)), const((C, 1)),                        # conv_d
            const((C, MIP)), const((C, 1)),                        # conv_h
            const((C, MIP)), const((C, 1)),                        # conv_w
        ],
        out_specs=pl.BlockSpec((NB, C, D, HW), lambda n: (n, 0, 0, 0)),
        out_shape=jax.ShapeDtypeStruct((N, C, D, HW), x.dtype),
        compiler_params=pltpu.CompilerParams(
            dimension_semantics=("parallel",),
            vmem_limit_bytes=vmem_limit,
        ),
    )(x2, *consts)

    return out.reshape(N, C, D, H, W)


# -----------------------------------------------------------------------------
# Pure-JAX reference (same eval-mode semantics) for a correctness check.
# -----------------------------------------------------------------------------
def coord_att_3d_ref(x, params):
    hp = jax.lax.Precision.HIGHEST
    n, c, d, h, w = x.shape
    pd = jnp.mean(x, axis=(3, 4))                 # (n,c,d)
    ph = jnp.mean(x, axis=(2, 4))                 # (n,c,h)
    pw = jnp.mean(x, axis=(2, 3))                 # (n,c,w)
    y = jnp.concatenate([pd, ph, pw], axis=-1)    # (n,c,d+h+w)
    y = jnp.einsum("mc,ncl->nml", params["w1"], y, precision=hp) + params["b1"][None]
    y = y * params["scale"][None] + params["shift"][None]
    y = y * jnp.clip(y + 3.0, 0.0, 6.0) / 6.0
    yd, yh, yw = y[..., :d], y[..., d:d + h], y[..., d + h:]
    ad = jax.nn.sigmoid(jnp.einsum("om,nml->nol", params["wd"], yd, precision=hp)
                        + params["bd"][None])
    ah = jax.nn.sigmoid(jnp.einsum("om,nml->nol", params["wh"], yh, precision=hp)
                        + params["bh"][None])
    aw = jax.nn.sigmoid(jnp.einsum("om,nml->nol", params["ww"], yw, precision=hp)
                        + params["bw"][None])
    return (x
            * ad[:, :, :, None, None]
            * ah[:, :, None, :, None]
            * aw[:, :, None, None, :])


def init_params(key, inp, oup, reduction=32):
    mip = max(8, inp // reduction)
    ks = jax.random.split(key, 8)

    def uinit(k, shape, fan_in):
        bound = 1.0 / math.sqrt(fan_in)
        return jax.random.uniform(k, shape, jnp.float32, -bound, bound)

    # 1x1x1 Conv3d weights stored as (out_ch, in_ch); biases as (out_ch, 1).
    w1 = uinit(ks[0], (mip, inp), inp)
    b1 = uinit(ks[1], (mip, 1), inp)
    wd = uinit(ks[2], (oup, mip), mip)
    bd = uinit(ks[3], (oup, 1), mip)
    wh = uinit(ks[4], (oup, mip), mip)
    bh = uinit(ks[5], (oup, 1), mip)
    ww = uinit(ks[6], (oup, mip), mip)
    bw = uinit(ks[7], (oup, 1), mip)

    # BatchNorm3d defaults (eval mode): gamma=1, beta=0, mean=0, var=1, eps=1e-5.
    eps = 1e-5
    gamma = jnp.ones((mip, 1), jnp.float32)
    beta = jnp.zeros((mip, 1), jnp.float32)
    r_mean = jnp.zeros((mip, 1), jnp.float32)
    r_var = jnp.ones((mip, 1), jnp.float32)
    scale = gamma / jnp.sqrt(r_var + eps)
    shift = beta - r_mean * scale

    return dict(w1=w1, b1=b1, scale=scale, shift=shift,
                wd=wd, bd=bd, wh=wh, bh=bh, ww=ww, bw=bw)


if __name__ == "__main__":
    N, C, D, H, W = 2, 16, 4, 6, 8          # inp == oup == 16, reduction=32 -> mip = 8
    key = jax.random.PRNGKey(0)
    k_x, k_p = jax.random.split(key)
    x = jax.random.normal(k_x, (N, C, D, H, W), jnp.float32)
    params = init_params(k_p, inp=C, oup=C, reduction=32)

    out = jax.block_until_ready(coord_att_3d(x, params))
    ref = jax.block_until_ready(coord_att_3d_ref(x, params))

    assert out.shape == x.shape and out.dtype == x.dtype
    err = float(jnp.max(jnp.abs(out - ref)))
    assert err < 5e-4, f"mismatch vs reference: max abs err = {err}"
    print("KERNEL_OK")
</pallas_src>

<mosaic_0001>
module attributes {stable_mosaic.version = 11 : i64} {
  func.func @coordatt_fused_kernel(%arg0: i32, %arg1: memref<1x16x4x48xf32, #tpu.memory_space<vmem>>, %arg2: memref<6x48xf32, #tpu.memory_space<vmem>>, %arg3: memref<8x48xf32, #tpu.memory_space<vmem>>, %arg4: memref<48x6xf32, #tpu.memory_space<vmem>>, %arg5: memref<48x8xf32, #tpu.memory_space<vmem>>, %arg6: memref<8x16xf32, #tpu.memory_space<vmem>>, %arg7: memref<8x1xf32, #tpu.memory_space<vmem>>, %arg8: memref<8x1xf32, #tpu.memory_space<vmem>>, %arg9: memref<8x1xf32, #tpu.memory_space<vmem>>, %arg10: memref<16x8xf32, #tpu.memory_space<vmem>>, %arg11: memref<16x1xf32, #tpu.memory_space<vmem>>, %arg12: memref<16x8xf32, #tpu.memory_space<vmem>>, %arg13: memref<16x1xf32, #tpu.memory_space<vmem>>, %arg14: memref<16x8xf32, #tpu.memory_space<vmem>>, %arg15: memref<16x1xf32, #tpu.memory_space<vmem>>, %arg16: memref<1x16x4x48xf32, #tpu.memory_space<vmem>>) attributes {dimension_semantics = [#tpu.dimension_semantics<parallel>], iteration_bounds = array<i64: 2>, scalar_prefetch = 0 : i64, scratch_operands = 0 : i64, tpu.core_type = #tpu.core_type<tc>, window_params = [{transform_indices = @transform_0, window_bounds = array<i64: 1, 16, 4, 48>}, {pipeline_mode = #tpu.pipeline_mode<synchronous>, transform_indices = @transform_1, window_bounds = array<i64: 6, 48>}, {pipeline_mode = #tpu.pipeline_mode<synchronous>, transform_indices = @transform_2, window_bounds = array<i64: 8, 48>}, {pipeline_mode = #tpu.pipeline_mode<synchronous>, transform_indices = @transform_3, window_bounds = array<i64: 48, 6>}, {pipeline_mode = #tpu.pipeline_mode<synchronous>, transform_indices = @transform_4, window_bounds = array<i64: 48, 8>}, {pipeline_mode = #tpu.pipeline_mode<synchronous>, transform_indices = @transform_5, window_bounds = array<i64: 8, 16>}, {pipeline_mode = #tpu.pipeline_mode<synchronous>, transform_indices = @transform_6, window_bounds = array<i64: 8, 1>}, {pipeline_mode = #tpu.pipeline_mode<synchronous>, transform_indices = @transform_7, window_bounds = array<i64: 8, 1>}, {pipeline_mode = #tpu.pipeline_mode<synchronous>, transform_indices = @transform_8, window_bounds = array<i64: 8, 1>}, {pipeline_mode = #tpu.pipeline_mode<synchronous>, transform_indices = @transform_9, window_bounds = array<i64: 16, 8>}, {pipeline_mode = #tpu.pipeline_mode<synchronous>, transform_indices = @transform_10, window_bounds = array<i64: 16, 1>}, {pipeline_mode = #tpu.pipeline_mode<synchronous>, transform_indices = @transform_11, window_bounds = array<i64: 16, 8>}, {pipeline_mode = #tpu.pipeline_mode<synchronous>, transform_indices = @transform_12, window_bounds = array<i64: 16, 1>}, {pipeline_mode = #tpu.pipeline_mode<synchronous>, transform_indices = @transform_13, window_bounds = array<i64: 16, 8>}, {pipeline_mode = #tpu.pipeline_mode<synchronous>, transform_indices = @transform_14, window_bounds = array<i64: 16, 1>}, {transform_indices = @transform_15, window_bounds = array<i64: 1, 16, 4, 48>}]} {
    %c0 = arith.constant 0 : index
    %c0_0 = arith.constant 0 : index
    %0 = vector.load %arg2[%c0, %c0_0] : memref<6x48xf32, #tpu.memory_space<vmem>>, vector<6x48xf32>
    %c0_1 = arith.constant 0 : index
    %c0_2 = arith.constant 0 : index
    %1 = vector.load %arg3[%c0_1, %c0_2] : memref<8x48xf32, #tpu.memory_space<vmem>>, vector<8x48xf32>
    %c0_3 = arith.constant 0 : index
    %c0_4 = arith.constant 0 : index
    %2 = vector.load %arg4[%c0_3, %c0_4] : memref<48x6xf32, #tpu.memory_space<vmem>>, vector<48x6xf32>
    %c0_5 = arith.constant 0 : index
    %c0_6 = arith.constant 0 : index
    %3 = vector.load %arg5[%c0_5, %c0_6] : memref<48x8xf32, #tpu.memory_space<vmem>>, vector<48x8xf32>
    %c0_7 = arith.constant 0 : index
    %c0_8 = arith.constant 0 : index
    %4 = vector.load %arg6[%c0_7, %c0_8] : memref<8x16xf32, #tpu.memory_space<vmem>>, vector<8x16xf32>
    %c0_9 = arith.constant 0 : index
    %c0_10 = arith.constant 0 : index
    %5 = vector.load %arg7[%c0_9, %c0_10] : memref<8x1xf32, #tpu.memory_space<vmem>>, vector<8x1xf32>
    %c0_11 = arith.constant 0 : index
    %c0_12 = arith.constant 0 : index
    %6 = vector.load %arg8[%c0_11, %c0_12] : memref<8x1xf32, #tpu.memory_space<vmem>>, vector<8x1xf32>
    %c0_13 = arith.constant 0 : index
    %c0_14 = arith.constant 0 : index
    %7 = vector.load %arg9[%c0_13, %c0_14] : memref<8x1xf32, #tpu.memory_space<vmem>>, vector<8x1xf32>
    %c0_15 = arith.constant 0 : index
    %c0_16 = arith.constant 0 : index
    %8 = vector.load %arg10[%c0_15, %c0_16] : memref<16x8xf32, #tpu.memory_space<vmem>>, vector<16x8xf32>
    %c0_17 = arith.constant 0 : index
    %c0_18 = arith.constant 0 : index
    %9 = vector.load %arg11[%c0_17, %c0_18] : memref<16x1xf32, #tpu.memory_space<vmem>>, vector<16x1xf32>
    %c0_19 = arith.constant 0 : index
    %c0_20 = arith.constant 0 : index
    %10 = vector.load %arg12[%c0_19, %c0_20] : memref<16x8xf32, #tpu.memory_space<vmem>>, vector<16x8xf32>
    %c0_21 = arith.constant 0 : index
    %c0_22 = arith.constant 0 : index
    %11 = vector.load %arg13[%c0_21, %c0_22] : memref<16x1xf32, #tpu.memory_space<vmem>>, vector<16x1xf32>
    %c0_23 = arith.constant 0 : index
    %c0_24 = arith.constant 0 : index
    %12 = vector.load %arg14[%c0_23, %c0_24] : memref<16x8xf32, #tpu.memory_space<vmem>>, vector<16x8xf32>
    %c0_25 = arith.constant 0 : index
    %c0_26 = arith.constant 0 : index
    %13 = vector.load %arg15[%c0_25, %c0_26] : memref<16x1xf32, #tpu.memory_space<vmem>>, vector<16x1xf32>
    %c0_27 = arith.constant 0 : index
    %c0_28 = arith.constant 0 : index
    %c0_29 = arith.constant 0 : index
    %c0_30 = arith.constant 0 : index
    %14 = vector.load %arg1[%c0_27, %c0_28, %c0_29, %c0_30] : memref<1x16x4x48xf32, #tpu.memory_space<vmem>>, vector<1x16x4x48xf32>
    %15 = vector.shape_cast %14 : vector<1x16x4x48xf32> to vector<16x4x48xf32>
    %cst = arith.constant dense<0.000000e+00> : vector<16x4xf32>
    %16 = vector.multi_reduction <add>, %15, %cst [2] : vector<16x4x48xf32> to vector<16x4xf32>
    %cst_31 = arith.constant 0.020833334 : f32
    %17 = vector.broadcast %cst_31 : f32 to vector<16x4xf32>
    %18 = arith.mulf %16, %17 : vector<16x4xf32>
    %cst_32 = arith.constant dense<0.000000e+00> : vector<16x48xf32>
    %19 = vector.multi_reduction <add>, %15, %cst_32 [1] : vector<16x4x48xf32> to vector<16x48xf32>
    %cst_33 = arith.constant dense<0.000000e+00> : vector<16x6xf32>
    %20 = tpu.matmul %19, %2, %cst_33 {dimension_numbers = #tpu.dot_dimension_numbers<[1], [0], [0], [1], [0, 0, 1, 1], [], []>, precision = #tpu.contract_precision<fp32>} : vector<16x48xf32>, vector<48x6xf32>, vector<16x6xf32> -> vector<16x6xf32>
    %cst_34 = arith.constant 3.125000e-02 : f32
    %21 = vector.broadcast %cst_34 : f32 to vector<16x6xf32>
    %22 = arith.mulf %20, %21 : vector<16x6xf32>
    %cst_35 = arith.constant dense<0.000000e+00> : vector<16x8xf32>
    %23 = tpu.matmul %19, %3, %cst_35 {dimension_numbers = #tpu.dot_dimension_numbers<[1], [0], [0], [1], [0, 0, 1, 1], [], []>, precision = #tpu.contract_precision<fp32>} : vector<16x48xf32>, vector<48x8xf32>, vector<16x8xf32> -> vector<16x8xf32>
    %cst_36 = arith.constant 0.0416666679 : f32
    %24 = vector.broadcast %cst_36 : f32 to vector<16x8xf32>
    %25 = arith.mulf %23, %24 : vector<16x8xf32>
    %cst_37 = arith.constant dense<0.000000e+00> : vector<8x4xf32>
    %26 = tpu.matmul %4, %18, %cst_37 {dimension_numbers = #tpu.dot_dimension_numbers<[1], [0], [0], [1], [0, 0, 1, 1], [], []>, precision = #tpu.contract_precision<fp32>} : vector<8x16xf32>, vector<16x4xf32>, vector<8x4xf32> -> vector<8x4xf32>
    %27 = vector.broadcast %5 : vector<8x1xf32> to vector<8x4xf32>
    %28 = arith.addf %26, %27 : vector<8x4xf32>
    %29 = vector.broadcast %6 : vector<8x1xf32> to vector<8x4xf32>
    %30 = arith.mulf %28, %29 : vector<8x4xf32>
    %31 = vector.broadcast %7 : vector<8x1xf32> to vector<8x4xf32>
    %32 = arith.addf %30, %31 : vector<8x4xf32>
    %cst_38 = arith.constant 3.000000e+00 : f32
    %33 = vector.broadcast %cst_38 : f32 to vector<8x4xf32>
    %34 = arith.addf %32, %33 : vector<8x4xf32>
    %cst_39 = arith.constant 0.000000e+00 : f32
    %cst_40 = arith.constant 6.000000e+00 : f32
    %35 = vector.broadcast %cst_39 : f32 to vector<8x4xf32>
    %36 = arith.maximumf %35, %34 : vector<8x4xf32>
    %37 = vector.broadcast %cst_40 : f32 to vector<8x4xf32>
    %38 = arith.minimumf %37, %36 : vector<8x4xf32>
    %39 = arith.mulf %32, %38 : vector<8x4xf32>
    %cst_41 = arith.constant 0.166666672 : f32
    %40 = vector.broadcast %cst_41 : f32 to vector<8x4xf32>
    %41 = arith.mulf %39, %40 : vector<8x4xf32>
    %cst_42 = arith.constant dense<0.000000e+00> : vector<16x4xf32>
    %42 = tpu.matmul %8, %41, %cst_42 {dimension_numbers = #tpu.dot_dimension_numbers<[1], [0], [0], [1], [0, 0, 1, 1], [], []>, precision = #tpu.contract_precision<fp32>} : vector<16x8xf32>, vector<8x4xf32>, vector<16x4xf32> -> vector<16x4xf32>
    %43 = vector.broadcast %9 : vector<16x1xf32> to vector<16x4xf32>
    %44 = arith.addf %42, %43 : vector<16x4xf32>
    %45 = arith.negf %44 : vector<16x4xf32>
    %46 = math.exp %45 : vector<16x4xf32>
    %cst_43 = arith.constant 1.000000e+00 : f32
    %47 = vector.broadcast %cst_43 : f32 to vector<16x4xf32>
    %48 = arith.addf %47, %46 : vector<16x4xf32>
    %49 = arith.divf %47, %48 : vector<16x4xf32>
    %cst_44 = arith.constant dense<0.000000e+00> : vector<8x6xf32>
    %50 = tpu.matmul %4, %22, %cst_44 {dimension_numbers = #tpu.dot_dimension_numbers<[1], [0], [0], [1], [0, 0, 1, 1], [], []>, precision = #tpu.contract_precision<fp32>} : vector<8x16xf32>, vector<16x6xf32>, vector<8x6xf32> -> vector<8x6xf32>
    %51 = vector.broadcast %5 : vector<8x1xf32> to vector<8x6xf32>
    %52 = arith.addf %50, %51 : vector<8x6xf32>
    %53 = vector.broadcast %6 : vector<8x1xf32> to vector<8x6xf32>
    %54 = arith.mulf %52, %53 : vector<8x6xf32>
    %55 = vector.broadcast %7 : vector<8x1xf32> to vector<8x6xf32>
    %56 = arith.addf %54, %55 : vector<8x6xf32>
    %cst_45 = arith.constant 3.000000e+00 : f32
    %57 = vector.broadcast %cst_45 : f32 to vector<8x6xf32>
    %58 = arith.addf %56, %57 : vector<8x6xf32>
    %cst_46 = arith.constant 0.000000e+00 : f32
    %cst_47 = arith.constant 6.000000e+00 : f32
    %59 = vector.broadcast %cst_46 : f32 to vector<8x6xf32>
    %60 = arith.maximumf %59, %58 : vector<8x6xf32>
    %61 = vector.broadcast %cst_47 : f32 to vector<8x6xf32>
    %62 = arith.minimumf %61, %60 : vector<8x6xf32>
    %63 = arith.mulf %56, %62 : vector<8x6xf32>
    %cst_48 = arith.constant 0.166666672 : f32
    %64 = vector.broadcast %cst_48 : f32 to vector<8x6xf32>
    %65 = arith.mulf %63, %64 : vector<8x6xf32>
    %cst_49 = arith.constant dense<0.000000e+00> : vector<16x6xf32>
    %66 = tpu.matmul %10, %65, %cst_49 {dimension_numbers = #tpu.dot_dimension_numbers<[1], [0], [0], [1], [0, 0, 1, 1], [], []>, precision = #tpu.contract_precision<fp32>} : vector<16x8xf32>, vector<8x6xf32>, vector<16x6xf32> -> vector<16x6xf32>
    %67 = vector.broadcast %11 : vector<16x1xf32> to vector<16x6xf32>
    %68 = arith.addf %66, %67 : vector<16x6xf32>
    %69 = arith.negf %68 : vector<16x6xf32>
    %70 = math.exp %69 : vector<16x6xf32>
    %cst_50 = arith.constant 1.000000e+00 : f32
    %71 = vector.broadcast %cst_50 : f32 to vector<16x6xf32>
    %72 = arith.addf %71, %70 : vector<16x6xf32>
    %73 = arith.divf %71, %72 : vector<16x6xf32>
    %cst_51 = arith.constant dense<0.000000e+00> : vector<8x8xf32>
    %74 = tpu.matmul %4, %25, %cst_51 {dimension_numbers = #tpu.dot_dimension_numbers<[1], [0], [0], [1], [0, 0, 1, 1], [], []>, precision = #tpu.contract_precision<fp32>} : vector<8x16xf32>, vector<16x8xf32>, vector<8x8xf32> -> vector<8x8xf32>
    %75 = vector.broadcast %5 : vector<8x1xf32> to vector<8x8xf32>
    %76 = arith.addf %74, %75 : vector<8x8xf32>
    %77 = vector.broadcast %6 : vector<8x1xf32> to vector<8x8xf32>
    %78 = arith.mulf %76, %77 : vector<8x8xf32>
    %79 = vector.broadcast %7 : vector<8x1xf32> to vector<8x8xf32>
    %80 = arith.addf %78, %79 : vector<8x8xf32>
    %cst_52 = arith.constant 3.000000e+00 : f32
    %81 = vector.broadcast %cst_52 : f32 to vector<8x8xf32>
    %82 = arith.addf %80, %81 : vector<8x8xf32>
    %cst_53 = arith.constant 0.000000e+00 : f32
    %cst_54 = arith.constant 6.000000e+00 : f32
    %83 = vector.broadcast %cst_53 : f32 to vector<8x8xf32>
    %84 = arith.maximumf %83, %82 : vector<8x8xf32>
    %85 = vector.broadcast %cst_54 : f32 to vector<8x8xf32>
    %86 = arith.minimumf %85, %84 : vector<8x8xf32>
    %87 = arith.mulf %80, %86 : vector<8x8xf32>
    %cst_55 = arith.constant 0.166666672 : f32
    %88 = vector.broadcast %cst_55 : f32 to vector<8x8xf32>
    %89 = arith.mulf %87, %88 : vector<8x8xf32>
    %cst_56 = arith.constant dense<0.000000e+00> : vector<16x8xf32>
    %90 = tpu.matmul %12, %89, %cst_56 {dimension_numbers = #tpu.dot_dimension_numbers<[1], [0], [0], [1], [0, 0, 1, 1], [], []>, precision = #tpu.contract_precision<fp32>} : vector<16x8xf32>, vector<8x8xf32>, vector<16x8xf32> -> vector<16x8xf32>
    %91 = vector.broadcast %13 : vector<16x1xf32> to vector<16x8xf32>
    %92 = arith.addf %90, %91 : vector<16x8xf32>
    %93 = arith.negf %92 : vector<16x8xf32>
    %94 = math.exp %93 : vector<16x8xf32>
    %cst_57 = arith.constant 1.000000e+00 : f32
    %95 = vector.broadcast %cst_57 : f32 to vector<16x8xf32>
    %96 = arith.addf %95, %94 : vector<16x8xf32>
    %97 = arith.divf %95, %96 : vector<16x8xf32>
    %cst_58 = arith.constant dense<0.000000e+00> : vector<16x48xf32>
    %98 = tpu.matmul %73, %0, %cst_58 {dimension_numbers = #tpu.dot_dimension_numbers<[1], [0], [0], [1], [0, 0, 1, 1], [], []>, precision = #tpu.contract_precision<fp32>} : vector<16x6xf32>, vector<6x48xf32>, vector<16x48xf32> -> vector<16x48xf32>
    %cst_59 = arith.constant dense<0.000000e+00> : vector<16x48xf32>
    %99 = tpu.matmul %97, %1, %cst_59 {dimension_numbers = #tpu.dot_dimension_numbers<[1], [0], [0], [1], [0, 0, 1, 1], [], []>, precision = #tpu.contract_precision<fp32>} : vector<16x8xf32>, vector<8x48xf32>, vector<16x48xf32> -> vector<16x48xf32>
    %100 = arith.mulf %98, %99 : vector<16x48xf32>
    %101 = vector.shape_cast %49 : vector<16x4xf32> to vector<16x4x1xf32>
    %102 = vector.broadcast %101 : vector<16x4x1xf32> to vector<16x4x48xf32>
    %103 = arith.mulf %15, %102 : vector<16x4x48xf32>
    %104 = vector.shape_cast %100 : vector<16x48xf32> to vector<16x1x48xf32>
    %105 = vector.broadcast %104 : vector<16x1x48xf32> to vector<16x4x48xf32>
    %106 = arith.mulf %103, %105 : vector<16x4x48xf32>
    %c0_60 = arith.constant 0 : index
    %c0_61 = arith.constant 0 : index
    %c0_62 = arith.constant 0 : index
    %c0_63 = arith.constant 0 : index
    %107 = vector.load %arg16[%c0_60, %c0_61, %c0_62, %c0_63] : memref<1x16x4x48xf32, #tpu.memory_space<vmem>>, vector<1x16x4x48xf32>
    %108 = vector.shape_cast %107 : vector<1x16x4x48xf32> to vector<16x4x48xf32>
    %109 = vector.shape_cast %106 : vector<16x4x48xf32> to vector<1x16x4x48xf32>
    tpu.vector_store %arg16[%c0_60, %c0_61, %c0_62, %c0_63], %109 {strides = array<i32>} : memref<1x16x4x48xf32, #tpu.memory_space<vmem>>, vector<1x16x4x48xf32>,
    return
  }
  func.func @transform_0(%arg0: i32) -> (i32, i32, i32, i32) {
    %c0_i32 = arith.constant 0 : i32
    %c0_i32_0 = arith.constant 0 : i32
    %c0_i32_1 = arith.constant 0 : i32
    %c0_i32_2 = arith.constant 0 : i32
    return %arg0, %c0_i32, %c0_i32_0, %c0_i32_1 : i32, i32, i32, i32
  }
  func.func @transform_1(%arg0: i32) -> (i32, i32) {
    %c0_i32 = arith.constant 0 : i32
    %c0_i32_0 = arith.constant 0 : i32
    %c0_i32_1 = arith.constant 0 : i32
    return %c0_i32, %c0_i32_0 : i32, i32
  }
  func.func @transform_2(%arg0: i32) -> (i32, i32) {
    %c0_i32 = arith.constant 0 : i32
    %c0_i32_0 = arith.constant 0 : i32
    %c0_i32_1 = arith.constant 0 : i32
    return %c0_i32, %c0_i32_0 : i32, i32
  }
  func.func @transform_3(%arg0: i32) -> (i32, i32) {
    %c0_i32 = arith.constant 0 : i32
    %c0_i32_0 = arith.constant 0 : i32
    %c0_i32_1 = arith.constant 0 : i32
    return %c0_i32, %c0_i32_0 : i32, i32
  }
  func.func @transform_4(%arg0: i32) -> (i32, i32) {
    %c0_i32 = arith.constant 0 : i32
    %c0_i32_0 = arith.constant 0 : i32
    %c0_i32_1 = arith.constant 0 : i32
    return %c0_i32, %c0_i32_0 : i32, i32
  }
  func.func @transform_5(%arg0: i32) -> (i32, i32) {
    %c0_i32 = arith.constant 0 : i32
    %c0_i32_0 = arith.constant 0 : i32
    %c0_i32_1 = arith.constant 0 : i32
    return %c0_i32, %c0_i32_0 : i32, i32
  }
  func.func @transform_6(%arg0: i32) -> (i32, i32) {
    %c0_i32 = arith.constant 0 : i32
    %c0_i32_0 = arith.constant 0 : i32
    %c0_i32_1 = arith.constant 0 : i32
    return %c0_i32, %c0_i32_0 : i32, i32
  }
  func.func @transform_7(%arg0: i32) -> (i32, i32) {
    %c0_i32 = arith.constant 0 : i32
    %c0_i32_0 = arith.constant 0 : i32
    %c0_i32_1 = arith.constant 0 : i32
    return %c0_i32, %c0_i32_0 : i32, i32
  }
  func.func @transform_8(%arg0: i32) -> (i32, i32) {
    %c0_i32 = arith.constant 0 : i32
    %c0_i32_0 = arith.constant 0 : i32
    %c0_i32_1 = arith.constant 0 : i32
    return %c0_i32, %c0_i32_0 : i32, i32
  }
  func.func @transform_9(%arg0: i32) -> (i32, i32) {
    %c0_i32 = arith.constant 0 : i32
    %c0_i32_0 = arith.constant 0 : i32
    %c0_i32_1 = arith.constant 0 : i32
    return %c0_i32, %c0_i32_0 : i32, i32
  }
  func.func @transform_10(%arg0: i32) -> (i32, i32) {
    %c0_i32 = arith.constant 0 : i32
    %c0_i32_0 = arith.constant 0 : i32
    %c0_i32_1 = arith.constant 0 : i32
    return %c0_i32, %c0_i32_0 : i32, i32
  }
  func.func @transform_11(%arg0: i32) -> (i32, i32) {
    %c0_i32 = arith.constant 0 : i32
    %c0_i32_0 = arith.constant 0 : i32
    %c0_i32_1 = arith.constant 0 : i32
    return %c0_i32, %c0_i32_0 : i32, i32
  }
  func.func @transform_12(%arg0: i32) -> (i32, i32) {
    %c0_i32 = arith.constant 0 : i32
    %c0_i32_0 = arith.constant 0 : i32
    %c0_i32_1 = arith.constant 0 : i32
    return %c0_i32, %c0_i32_0 : i32, i32
  }
  func.func @transform_13(%arg0: i32) -> (i32, i32) {
    %c0_i32 = arith.constant 0 : i32
    %c0_i32_0 = arith.constant 0 : i32
    %c0_i32_1 = arith.constant 0 : i32
    return %c0_i32, %c0_i32_0 : i32, i32
  }
  func.func @transform_14(%arg0: i32) -> (i32, i32) {
    %c0_i32 = arith.constant 0 : i32
    %c0_i32_0 = arith.constant 0 : i32
    %c0_i32_1 = arith.constant 0 : i32
    return %c0_i32, %c0_i32_0 : i32, i32
  }
  func.func @transform_15(%arg0: i32) -> (i32, i32, i32, i32) {
    %c0_i32 = arith.constant 0 : i32
    %c0_i32_0 = arith.constant 0 : i32
    %c0_i32_1 = arith.constant 0 : i32
    %c0_i32_2 = arith.constant 0 : i32
    return %arg0, %c0_i32, %c0_i32_0, %c0_i32_1 : i32, i32, i32, i32
  }
}

</mosaic_0001>

<bundles_post_ra>
// kernel: tpu_custom_call.1
= control target key start
LH: loop header
LB: loop body
LE: loop exit
PB: predicated region body
PF: predicated region fallthrough
CT: control target
= control target key end

     0   :  { %s4192_s0 = inlined_call_operand.hbm [shape: f32[2,16,4,48], index: 0, kind: input, shape index: {}]   ;;  %s4193_s1 = inlined_call_operand.vmem [shape: f32[6,48], index: 1, kind: input, shape index: {}]   ;;  %s4194_s2 = inlined_call_operand.vmem [shape: f32[8,48], index: 2, kind: input, shape index: {}]   ;;  %s4195_s3 = inlined_call_operand.vmem [shape: f32[48,6], index: 3, kind: input, shape index: {}]   ;;  %s4196_s4 = inlined_call_operand.vmem [shape: f32[48,8], index: 4, kind: input, shape index: {}]   ;;  %s4197_s5 = inlined_call_operand.vmem [shape: f32[8,16], index: 5, kind: input, shape index: {}]   ;;  %s4198_s6 = inlined_call_operand.vmem [shape: f32[8,1], index: 6, kind: input, shape index: {}]   ;;  %s4199_s7 = inlined_call_operand.vmem [shape: f32[8,1], index: 7, kind: input, shape index: {}]   ;;  %s4200_s8 = inlined_call_operand.vmem [shape: f32[8,1], index: 8, kind: input, shape index: {}]   ;;  %s4201_s9 = inlined_call_operand.vmem [shape: f32[16,8], index: 9, kind: input, shape index: {}]   ;;  %s4202_s10 = inlined_call_operand.vmem [shape: f32[16,1], index: 10, kind: input, shape index: {}]   ;;  %s4203_s11 = inlined_call_operand.vmem [shape: f32[16,8], index: 11, kind: input, shape index: {}]   ;;  %s4204_s12 = inlined_call_operand.vmem [shape: f32[16,1], index: 12, kind: input, shape index: {}]   ;;  %s4205_s13 = inlined_call_operand.vmem [shape: f32[16,8], index: 13, kind: input, shape index: {}]   ;;  %s4206_s14 = inlined_call_operand.vmem [shape: f32[16,1], index: 14, kind: input, shape index: {}]   ;;  %s4207_s15 = inlined_call_operand.hbm [shape: f32[2,16,4,48], index: 15, kind: output, shape index: {}]  }
   0x1   :  { %4217 = sst [smem:[#allocation15_spill]] %s4192_s0 }
   0x2   :  { %4218 = sst [smem:[#allocation16_spill]] %s4193_s1 }
   0x3   :  { %4219 = sst [smem:[#allocation17_spill]] %s4194_s2 }
   0x4   :  { %4220 = sst [smem:[#allocation18_spill]] %s4207_s15 }
   0x5   :  { %20 = vsyncpa [#allocation3], 0 }
   0x6   :  { %22 = vsyncpa [#allocation3 + $0x1], 0 }
   0x7   :  { %23 = vsyncpa [#allocation4], 0 }
   0x8   :  { %25 = vsyncpa [#allocation4 + $0x1], 0  ;;  %s3485_s18 = smov 0   ;;  %s3487_s19 = smov 0  }
   0x9   :  { %s3489_s20 = smov 0   ;;  %s3491_s21 = smov 0  }
   0xa LB: > { %4221 = sst [smem:[#allocation8_spill]] %s3386_s18  ;;  %s3506_s22 = sadd.s32 4294967295, %s3398_s21   ;;  %s3398_s21 = sphi %s3491_s21, %s4242_s21   ;;  %s3394_s20 = sphi %s3489_s20, %s4244_s20   ;;  %s3390_s19 = sphi %s3487_s19, %s4246_s19   ;;  %s3386_s18 = sphi %s3485_s18, %s4245_s18  }
   0xb   : > { %4222 = sst [smem:[#allocation9_spill]] %s3394_s20  ;;  %s3183_s23 = sadd.s32 4294967294, %s3398_s21  }
   0xc   : > { %4223 = sst [smem:[#allocation10_spill]] %s3506_s22  ;;  %s3510_s24 = sadd.s32 1, %s3398_s21  }
   0xd   : > { %4224 = sst [smem:[#allocation11_spill]] %s3510_s24  ;;  %s38_s25 = sadd.s32 1, %s3394_s20 }
   0xe   : > { %s35_s26 = ssub.s32 %s3398_s21, %s3510_s24  ;;  %p45_p0 = scmp.ne.s32.totalorder %s3394_s20, %s3390_s19 }
   0xf   : > { %p36_p1 = scmp.eq.s32.totalorder %s35_s26, 0  ;;  %p46_p2 = scmp.eq.s32.totalorder %s3398_s21, 0 }
  0x10   : > { %p51_p3 = scmp.ne.s32.totalorder %s3390_s19, %s3386_s18  ;;  %p52_p4 = scmp.eq.s32.totalorder %s3506_s22, 0 }
  0x11   : > { %s3522_s27 = scalar_select %p36_p1, %s3394_s20, %s38_s25  }
  0x12   : > { %p3524_p5 = por %p46_p2, %p45_p0  ;;  %p3528_p6 = por %p52_p4, %p51_p3 }
  0x13   : > { %4225 = sst [smem:[#allocation12_spill]] %s3522_s27  ;;  %p369_p7 = scmp.eq.s32.totalorder %s3506_s22, 1 }
  0x14   : > { %p375_p8 = scmp.eq.s32.totalorder %s3183_s23, 1  ;;  %p3217_p10 = scmp.lt.s32.totalorder %s3398_s21, 2 }
  0x15   : > { %p3535_p11 = por %p369_p7, %p45_p0  ;;  %s437_s17 = sand.u32 1, %s3394_s20  }
  0x16   : > { %p3539_p12 = por %p375_p8, %p51_p3  ;;  %s3203_s25 = sshll.u32 %s3398_s21, 6 }
  0x17   : > { %s4228_s30 = scalar_select %p3535_p11, 1, 0 }
  0x18   : > { %s4230_s16 = scalar_select %p3539_p12, 1, 0 }
  0x19   : > { %4229 = sst [smem:[#allocation13_spill]] %s4228_s30  ;;  %s3186_s26 = sshll.u32 %s437_s17, 6 }
  0x1a   : > { %4231 = sst [smem:[#allocation14_spill]] %s4230_s16  ;;  %s441_s23 = scalar_lea.vmem [#allocation2], %s3186_s26 }
  0x1b   : > { %s4232_s0 = sld [smem:[#allocation15_spill]]  ;;  %s449_s22 = sshll.u32 %s441_s23, 4  ;;  %s450_s22 = int_to_ptr.vmem [resolvable:$true] %s449_s22 }
  0x1c   : > { %p3550_p13 = pnand %p3217_p10, %p3524_p5  ;;  %p3189_p0 = scmp.ge.s32.totalorder %s3398_s21, 1 }
  0x1d   : > { %p457_p1 = scmp.lt.s32.totalorder %s3398_s21, 3  ;;  %s438_s20 = scalar_lea.sflag [#allocation3], %s437_s17 }
  0x1e   : > { %p3306_p3 = pneg %p3550_p13 }
  0x21   : > { %s446_s18 = scalar_lea.hbm %s4232_s0, %s3203_s25  ;;  %s3309_s27 = scalar_lea.hbm %s4232_s0, 128 }
  0x22   : > { %s447_s15 = sshll.u32 %s446_s18, 4  ;;  %s448_s15 = int_to_ptr.hbm [resolvable:$true] %s447_s15 }
  0x23   : > { %s3302_s16 = sshra.s32 %s448_s15, 4  ;;  %s3303_s16 = int_to_ptr.hbm [resolvable:$true] %s3302_s16 }
  0x24   : > { %s3304_s30 = scalar_lea.hbm %s3303_s16, 64  ;;  %p3310_p5 = scmp.lt.s32.totalorder %s3303_s16, %s4232_s0 }
  0x25   : > { %p3305_p2 = scmp.ne.s32.totalorder %s3303_s16, %s3304_s30  ;;  %p3311_p8 = scmp.lt.s32.totalorder %s3309_s27, %s3304_s30 }
  0x27   : > { %p3307_p4 = pnand %p3306_p3, %p3305_p2  ;;  %p3312_p10 = por %p3311_p8, %p3310_p5 }
  0x29   : > { %p3308_p7 = pneg %p3307_p4 }
  0x2b   : > { %p3313_p9 = pnand %p3312_p10, %p3308_p7 }
  0x2d   : > { %3316 = shalt.err (!%p3313_p9)
}
  0x2e   : > { %s3400_s17 = smov 64   ;;  %s3401_s26 = smov 4  }
  0x2f   : > { %3212 = dma.hbm_to_vmem [thread:$0]  (!%p3550_p13), %s448_s15, 1024, %s450_s22, %s438_s20, %s3400_s17, %s3400_s17, %s3401_s26  }
  0x30   : > { %p458_p2 = pnand %p3189_p0, %p457_p1 }
  0x31   : > { %s3571_s23 = sand.u32 (!%p458_p2), 1, %s3390_s19  }
  0x32   : > { %461 = sbr.rel (%p458_p2) target bundleno = 1142 (0x476), region = 80  ;;  %s3190_s30 = sshll.u32 (!%p458_p2), %s3571_s23, 6 }
  0x33   : > { %s464_s16 = scalar_lea.sflag (!%p458_p2), [#allocation3], %s3571_s23  ;;  %s3577_s18 = scalar_lea.vmem (!%p458_p2), [#allocation2], %s3190_s30 }
  0x37   : > { %3377 = dma.done.wait (%p3528_p6), %s464_s16, 1024  }
  0x38   : > { %3379 = vsyncadd (%p3528_p6), %s464_s16, 4294966272  ;;  %vm561_vm0 = vcmask 388096   ;;  %v555_v0 = vld [vmem:[%s3577_s18 + $0x28] sm:$0xf]  ;;  %v553_v1 = vld [vmem:[%s3577_s18 + $0x20] sm:$0xf] }
  0x39   : > { %v546_v2 = vld [vmem:[%s3577_s18 + $0x4] sm:$0xf]  ;;  %v592_v3 = vsel %vm561_vm0, %v555_v0, 0.0  ;;  %v586_v4 = vsel %vm561_vm0, %v553_v1, 0.0  ;;  %v545_v11 = vld [vmem:[%s3577_s18] sm:$0xf] }
  0x3a   : > { %v565_v5 = vsel %vm561_vm0, %v546_v2, 0.0  ;;  %v554_v6 = vld [vmem:[%s3577_s18 + $0x24] sm:$0xf]  ;;  %593 = vadd.xlane.f32.xlu1 %v592_v3  ;;  %v686_v7 = vrot.slane %v592_v3, 4  ;;  %587 = vadd.xlane.f32.xlu0 %v586_v4  ;;  %v674_v8 = vrot.slane %v586_v4, 4  ;;  %v562_v13 = vsel %vm561_vm0, %v545_v11, 0.0 }
  0x3b   : > { %v632_v9 = vrot.slane %v565_v5, 4  ;;  %v589_v10 = vsel %vm561_vm0, %v554_v6, 0.0  ;;  %566 = vadd.xlane.f32.xlu2 %v565_v5  ;;  %v556_v14 = vld [vmem:[%s3577_s18 + $0x2c] sm:$0xf]  ;;  %v547_v15 = vld [vmem:[%s3577_s18 + $0x8] sm:$0xf] }
  0x3c   : > { %v680_v12 = vrot.slane %v589_v10, 4  ;;  %v687_v16 = vadd.f32 %v686_v7, %v592_v3  ;;  %v675_v17 = vadd.f32 %v674_v8, %v586_v4  ;;  %v626_v19 = vrot.slane %v562_v13, 4  ;;  %v557_v20 = vld [vmem:[%s3577_s18 + $0x30] sm:$0xf]  ;;  %v548_v41 = vld [vmem:[%s3577_s18 + $0xc] sm:$0xf] }
  0x3d   : > { %v633_v18 = vadd.f32 %v632_v9, %v565_v5  ;;  %vm738_vm1 = vcmask 1041409   ;;  %v595_v22 = vsel %vm561_vm0, %v556_v14, 0.0  ;;  %v568_v23 = vsel %vm561_vm0, %v547_v15, 0.0  ;;  %v558_v46 = vld [vmem:[%s3577_s18 + $0x34] sm:$0xf]  ;;  %s4234_s1 = sld [smem:[#allocation16_spill]] }
  0x3e   : > { %v681_v21 = vadd.f32 %v680_v12, %v589_v10  ;;  %v598_v24 = vsel %vm561_vm0, %v557_v20, 0.0  ;;  %v688_v25 = vrot.slane %v687_v16, 2  ;;  %v676_v26 = vrot.slane %v675_v17, 2  ;;  %v549_v51 = vld [vmem:[%s3577_s18 + $0x10] sm:$0xf]  ;;  %s4235_s2 = sld [smem:[#allocation17_spill]] }
  0x3f   : > { %v634_v27 = vrot.slane %v633_v18, 2  ;;  %v627_v28 = vadd.f32 %v626_v19, %v562_v13  ;;  %v692_v30 = vrot.slane %v595_v22, 4  ;;  %vm740_vm2 = vcmask 1042434   ;;  %v559_v0 = vld [vmem:[%s3577_s18 + $0x38] sm:$0xf]  ;;  %s4111_s15 = scalar_lea.vmem [#allocation5], %s3190_s30 }
  0x40   : > { %v682_v29 = vrot.slane %v681_v21, 2  ;;  %v638_v31 = vrot.slane %v568_v23, 4  ;;  %v698_v32 = vrot.slane %v598_v24, 4  ;;  %v689_v33 = vadd.f32 %v688_v25, %v687_v16  ;;  %v550_v5 = vld [vmem:[%s3577_s18 + $0x14] sm:$0xf]  ;;  %s4236_s30 = sld [smem:[#allocation10_spill]] }
  0x41   : > { %v677_v34 = vadd.f32 %v676_v26, %v675_v17  ;;  %v635_v35 = vadd.f32 %v634_v27, %v633_v18  ;;  %v628_v36 = vrot.slane %v627_v28, 2  ;;  %v693_v38 = vadd.f32 %v692_v30, %v595_v22  ;;  %v560_v18 = vld [vmem:[%s3577_s18 + $0x3c] sm:$0xf]  ;;  %v551_v19 = vld [vmem:[%s3577_s18 + $0x18] sm:$0xf]  ;;  %s4237_s24 = sld [smem:[#allocation18_spill]] }
  0x42   : > { %v683_v37 = vadd.f32 %v682_v29, %v681_v21  ;;  %v639_v39 = vadd.f32 %v638_v31, %v568_v23  ;;  %v699_v40 = vadd.f32 %v698_v32, %v598_v24  ;;  %v690_v42 = vrot.slane %v689_v33, 1  ;;  %590 = vadd.xlane.f32.xlu0 %v589_v10  ;;  %563 = vadd.xlane.f32.xlu1 %v562_v13  ;;  %s3107_s28 = sshll.u32 %s4111_s15, 4  ;;  %s3108_s28 = int_to_ptr.vmem [resolvable:$true] %s3107_s28 }
  0x43   : > { %v678_v43 = vrot.slane %v677_v34, 1  ;;  %v636_v44 = vrot.slane %v635_v35, 1  ;;  %v629_v45 = vadd.f32 %v628_v36, %v627_v28  ;;  %vm742_vm3 = vcmask 1043459   ;;  %596 = vadd.xlane.f32.xlu2 %v595_v22  ;;  %v552_v28 = vld [vmem:[%s3577_s18 + $0x1c] sm:$0xf] }
  0x44   : > { %v684_v47 = vrot.slane %v683_v37, 1  ;;  %v694_v48 = vrot.slane %v693_v38, 2  ;;  %v640_v49 = vrot.slane %v639_v39, 2  ;;  %v700_v50 = vrot.slane %v699_v40, 2 }
  0x45   : > { %vm744_vm4 = vcmask 1044484   ;;  %v691_v52 = vadd.f32 %v690_v42, %v689_v33  ;;  %v679_v53 = vadd.f32 %v678_v43, %v677_v34  ;;  %v637_v54 = vadd.f32 %v636_v44, %v635_v35 }
  0x46   : > { %v630_v55 = vrot.slane %v629_v45, 1  ;;  %v685_v56 = vadd.f32 %v684_v47, %v683_v37  ;;  %v695_v57 = vadd.f32 %v694_v48, %v693_v38  ;;  %v641_v58 = vadd.f32 %v640_v49, %v639_v39  ;;  %s3204_s20 = sshll.u32 %s4236_s30, 6 }
  0x47   : > { %v701_v59 = vadd.f32 %v700_v50, %v699_v40  ;;  %v571_v61 = vsel %vm561_vm0, %v548_v41, 0.0  ;;  %v601_v62 = vsel %vm561_vm0, %v558_v46, 0.0  ;;  %v574_v63 = vsel %vm561_vm0, %v549_v51, 0.0  ;;  %s3106_s27 = scalar_lea.hbm %s4237_s24, %s3204_s20  ;;  %s3352_s20 = scalar_lea.hbm %s4237_s24, 128 }
  0x48   : > { %v631_v60 = vadd.f32 %v630_v55, %v629_v45  ;;  %v752_v1 = vsel %vm738_vm1, %v685_v56, %v679_v53  ;;  %v696_v2 = vrot.slane %v695_v57, 1  ;;  %v642_v3 = vrot.slane %v641_v58, 1  ;;  %s3109_s25 = sshll.u32 %s3106_s27, 4  ;;  %s3110_s25 = int_to_ptr.hbm [resolvable:$true] %s3109_s25 }
  0x49   : > { %v702_v4 = vrot.slane %v701_v59, 1  ;;  %v753_v7 = vsel %vm740_vm2, %v691_v52, %v752_v1  ;;  %v644_v8 = vrot.slane %v571_v61, 4  ;;  %v704_v9 = vrot.slane %v601_v62, 4  ;;  %s3346_s26 = sshra.s32 %s3110_s25, 4  ;;  %s3347_s26 = int_to_ptr.hbm [resolvable:$true] %s3346_s26 }
  0x4a   : > { %v739_v6 = vsel %vm738_vm1, %v637_v54, %v631_v60  ;;  %v697_v10 = vadd.f32 %v696_v2, %v695_v57  ;;  %v643_v11 = vadd.f32 %v642_v3, %v641_v58  ;;  %v650_v13 = vrot.slane %v574_v63, 4  ;;  %569 = vadd.xlane.f32.xlu0 %v568_v23  ;;  %599 = vadd.xlane.f32.xlu1 %v598_v24  ;;  %v522_v57 = vld [vmem:[%s4195_s3 + $0x28] sm:$0xff]  ;;  %v521_v58 = vld [vmem:[%s4195_s3 + $0x20] sm:$0xff]  ;;  %s3348_s16 = scalar_lea.hbm %s3347_s26, 64  ;;  %p3353_p0 = scmp.lt.s32.totalorder %s3347_s26, %s4237_s24 }
  0x4b   : > { %v703_v12 = vadd.f32 %v702_v4, %v701_v59  ;;  %v645_v14 = vadd.f32 %v644_v8, %v571_v61  ;;  %v705_v15 = vadd.f32 %v704_v9, %v601_v62  ;;  %v604_v16 = vsel %vm561_vm0, %v559_v0, 0.0  ;;  %572 = vadd.xlane.f32.xlu2 %v571_v61  ;;  %p3349_p6 = scmp.ne.s32.totalorder %s3347_s26, %s3348_s16  ;;  %p3354_p1 = scmp.lt.s32.totalorder %s3352_s20, %s3348_s16 }
  0x4c   : > { %v3612_v17 = vsel %vm561_vm0, %v550_v5, 0.0  ;;  %v754_v20 = vsel %vm742_vm3, %v697_v10, %v753_v7  ;;  %v741_v21 = vsel %vm740_vm2, %v643_v11, %v739_v6  ;;  %v651_v22 = vadd.f32 %v650_v13, %v574_v63  ;;  %v517_v13 = vld [vmem:[%s4195_s3] sm:$0xff] }
  0x4d   : > { %v710_v25 = vrot.slane %v604_v16, 4  ;;  %v755_v23 = vsel %vm744_vm4, %v703_v12, %v754_v20  ;;  %v646_v24 = vrot.slane %v645_v14, 2  ;;  %v706_v26 = vrot.slane %v705_v15, 2  ;;  %v518_v12 = vld [vmem:[%s4195_s3 + $0x8] sm:$0xff]  ;;  %p3350_p9 = pnand %p3349_p6, %p3535_p11  ;;  %p3355_p3 = por %p3354_p1, %p3353_p0 }
  0x4e   : > { %v656_v27 = vrot.slane %v3612_v17, 4  ;;  %v652_v29 = vrot.slane %v651_v22, 2  ;;  %v607_v31 = vsel %vm561_vm0, %v560_v18, 0.0  ;;  %v3623_v32 = vsel %vm561_vm0, %v551_v19, 0.0 }
  0x4f   : > { %v711_v30 = vadd.f32 %v710_v25, %v604_v16  ;;  %v647_v33 = vadd.f32 %v646_v24, %v645_v14  ;;  %v707_v34 = vadd.f32 %v706_v26, %v705_v15  ;;  %v716_v36 = vrot.slane %v607_v31, 4  ;;  %p3351_p13 = pneg %p3350_p9 }
  0x50   : > { %v657_v35 = vadd.f32 %v656_v27, %v3612_v17  ;;  %v653_v37 = vadd.f32 %v652_v29, %v651_v22  ;;  %v662_v39 = vrot.slane %v3623_v32, 4  ;;  %v3628_v40 = vsel %vm561_vm0, %v552_v28, 0.0 }
  0x51   : > { %v712_v38 = vrot.slane %v711_v30, 2  ;;  %v648_v41 = vrot.slane %v647_v33, 1  ;;  %v708_v42 = vrot.slane %v707_v34, 1  ;;  %v717_v44 = vadd.f32 %v716_v36, %v607_v31  ;;  %v528_v36 = vld [vmem:[%s4196_s4 + $0x28] sm:$0xff]  ;;  %p3356_p4 = pnand %p3355_p3, %p3351_p13 }
  0x52   : > { %v658_v43 = vrot.slane %v657_v35, 2  ;;  %v654_v45 = vrot.slane %v653_v37, 1  ;;  %v663_v47 = vadd.f32 %v662_v39, %v3623_v32  ;;  %v668_v48 = vrot.slane %v3628_v40, 4  ;;  %602 = vadd.xlane.f32.xlu0 %v601_v62  ;;  %575 = vadd.xlane.f32.xlu1 %v574_v63  ;;  %v520_v62 = vld [vmem:[%s4195_s3 + $0x18] sm:$0xff]  ;;  %v519_v63 = vld [vmem:[%s4195_s3 + $0x10] sm:$0xff] }
  0x53   : > { %v713_v46 = vadd.f32 %v712_v38, %v711_v30  ;;  %v649_v49 = vadd.f32 %v648_v41, %v647_v33  ;;  %v709_v50 = vadd.f32 %v708_v42, %v707_v34  ;;  %v718_v52 = vrot.slane %v717_v44, 2  ;;  %605 = vadd.xlane.f32.xlu2 %v604_v16 }
  0x54   : > { %v659_v51 = vadd.f32 %v658_v43, %v657_v35  ;;  %v655_v53 = vadd.f32 %v654_v45, %v653_v37  ;;  %v664_v55 = vrot.slane %v663_v47, 2  ;;  %v669_v56 = vadd.f32 %v668_v48, %v3628_v40 }
  0x55   : > { %v714_v54 = vrot.slane %v713_v46, 1  ;;  %v743_v59 = vsel %vm742_vm3, %v649_v49, %v741_v21  ;;  %vm746_vm5 = vcmask 1045509   ;;  %v719_v61 = vadd.f32 %v718_v52, %v717_v44 }
  0x56   : > { %v660_v60 = vrot.slane %v659_v51, 1  ;;  %v3647_v0 = vsel %vm746_vm5, %v709_v50, %v755_v23  ;;  %v745_v1 = vsel %vm744_vm4, %v655_v53, %v743_v59  ;;  %v665_v2 = vadd.f32 %v664_v55, %v663_v47 }
  0x57   : > { %v670_v3 = vrot.slane %v669_v56, 2  ;;  %v3650_v4 = vadd.f32 %v714_v54, %v713_v46  ;;  %v3652_v6 = vand.u32 4294901760, %v522_v57  ;;  %v3654_v7 = vand.u32 4294901760, %v521_v58 }
  0x58   : > { %v661_v5 = vadd.f32 %v660_v60, %v659_v51  ;;  %v666_v8 = vrot.slane %v665_v2, 1  ;;  %v3656_v10 = vand.u32 4294901760, %v520_v62  ;;  %v3658_v11 = vand.u32 4294901760, %v519_v63 }
  0x59   : > { %v671_v9 = vadd.f32 %v670_v3, %v669_v56  ;;  %v720_v15 = vrot.slane %v719_v61, 1  ;;  %v3668_v16 = vsub.f32 %v522_v57, %v3652_v6  ;;  %775 = vmatpush.msra.mxu0 %v3652_v6  ;;  %v3672_v18 = vsub.f32 %v521_v58, %v3654_v7  ;;  %908 = vmatpush.msra.mxu3 %v3652_v6  ;;  %v527_v56 = vld [vmem:[%s4196_s4 + $0x20] sm:$0xff]  ;;  %v526_v3 = vld [vmem:[%s4196_s4 + $0x18] sm:$0xff] }
  0x5a   : > { %v747_v14 = vsel %vm746_vm5, %v661_v5, %v745_v1  ;;  %v667_v19 = vadd.f32 %v666_v8, %v665_v2  ;;  %v3676_v21 = vsub.f32 %v520_v62, %v3656_v10  ;;  %v3679_v22 = vsub.f32 %v519_v63, %v3658_v11  ;;  %578 = vadd.xlane.f32.xlu0 %v3612_v17 }
  0x5b   : > { %v672_v20 = vrot.slane %v671_v9, 1  ;;  %608 = vadd.xlane.f32.xlu1 %v607_v31  ;;  %v815_v25 = vand.u32 4294901760, %v3668_v16  ;;  %v821_v23 = vand.u32 4294901760, %v3672_v18  ;;  %v3684_v24 = vand.u32 4294901760, %v518_v12  ;;  %581 = vadd.xlane.f32.xlu2 %v3623_v32 }
  0x5c   : > { %v3686_v26 = vand.u32 4294901760, %v517_v13  ;;  %870 = vmatpush.msra.mxu2 %v3668_v16  ;;  %v827_v28 = vand.u32 4294901760, %v3676_v21  ;;  %v833_v29 = vand.u32 4294901760, %v3679_v22  ;;  %vm748_vm6 = vcmask 1046534   ;;  %777 = vmatpush.msra.mxu0 %v3654_v7 }
  0x5d   : > { %v673_v27 = vadd.f32 %v672_v20, %v671_v9  ;;  %v816_v17 = vsub.f32 %v3668_v16, %v815_v25  ;;  %910 = vmatpush.msra.mxu3 %v3654_v7  ;;  %v822_v30 = vsub.f32 %v3672_v18, %v821_v23  ;;  %v3701_v31 = vsub.f32 %v518_v12, %v3684_v24 }
  0x5e   : > { %vm750_vm7 = vcmask 1047559   ;;  %873 = vmatpush.msra.mxu2 %v3672_v18  ;;  %v828_v32 = vsub.f32 %v3676_v21, %v827_v28  ;;  %v834_v33 = vsub.f32 %v3679_v22, %v833_v29  ;;  %v3711_v34 = vsub.f32 %v517_v13, %v3686_v26  ;;  %779 = vmatpush.msra.mxu0 %v3656_v10  ;;  %v523_v18 = vld [vmem:[%s4196_s4] sm:$0xff] }
  0x5f   : > { %v749_v35 = vsel %vm748_vm6, %v667_v19, %v747_v14  ;;  %v817_v37 = vand.u32 4294901760, %v816_v17  ;;  %v823_v38 = vand.u32 4294901760, %v822_v30  ;;  %912 = vmatpush.msra.mxu3 %v3656_v10  ;;  %vm759_vm8 = vcmask 392192  }
  0x60   : > { %v751_v39 = vsel %vm750_vm7, %v673_v27, %v749_v35  ;;  %v721_v41 = vadd.f32 %v720_v15, %v719_v61  ;;  %876 = vmatpush.msra.mxu2 %v3676_v21  ;;  %v839_v43 = vand.u32 4294901760, %v3701_v31  ;;  %781 = vmatpush.msra.mxu0 %v3658_v11  ;;  %v829_v44 = vand.u32 4294901760, %v828_v32 }
  0x61   : > { %v760_v42 = vsel %vm759_vm8, %v751_v39, 0  ;;  %818 = vmatpush.msra.mxu1 %v817_v37  ;;  %v845_v46 = vand.u32 4294901760, %v3711_v34  ;;  %v3727_v47 = vand.u32 4294901760, %v528_v36  ;;  %914 = vmatpush.msra.mxu3 %v3658_v11  ;;  %v757_v49 = vsel %vm748_vm6, %v3650_v4, %v3647_v0 }
  0x62   : > { %v3724_v45 = vand.u32 4294901760, %v760_v42  ;;  %879 = vmatpush.msra.mxu2 %v3679_v22  ;;  %v840_v48 = vsub.f32 %v3701_v31, %v839_v43  ;;  %584 = vadd.xlane.f32.xlu0 %v3628_v40  ;;  %v835_v50 = vand.u32 4294901760, %v834_v33  ;;  %v758_v54 = vsel %vm750_vm7, %v721_v41, %v757_v49 }
  0x63   : > { %824 = vmatpush.msra.mxu1 %v823_v38  ;;  %v846_v52 = vsub.f32 %v3711_v34, %v845_v46  ;;  %v3741_v53 = vsub.f32 %v528_v36, %v3727_v47  ;;  %783 = vmatpush.msra.mxu0 %v3684_v24  ;;  %v762_v58 = vsel %vm759_vm8, %v758_v54, 0  ;;  %v3765_v62 = vand.u32 4294901760, %v527_v56 }
  0x64   : > { %v3737_v51 = vsub.f32 %v760_v42, %v3724_v45  ;;  %882 = vmatpush.msra.mxu2 %v3701_v31  ;;  %916 = vmatpush.msra.mxu3 %v3684_v24  ;;  %v841_v40 = vand.u32 4294901760, %v840_v48  ;;  %v3770_v1 = vand.u32 4294901760, %v762_v58  ;;  %v3802_v4 = vand.u32 4294901760, %v526_v3  ;;  %v530_v42 = vld [vmem:[%s4198_s6] sm:$0xff]  ;;  %v540_v48 = vld [vmem:[%s4204_s12 + $0x8] sm:$0xff] }
  0x65   : > { %830 = vmatpush.msra.mxu1 %v829_v44  ;;  %v1059_v57 = vand.u32 4294901760, %v3741_v53  ;;  %785 = vmatpush.msra.mxu0 %v3686_v26  ;;  %v847_v60 = vand.u32 4294901760, %v846_v52  ;;  %v1064_v5 = vsub.f32 %v527_v56, %v3765_v62  ;;  %v1028_v22 = vand.u32 4294901760, %v523_v18 }
  0x66   : > { %v3748_v55 = vand.u32 4294901760, %v3737_v51  ;;  %885 = vmatpush.msra.mxu2 %v3711_v34  ;;  %918 = vmatpush.msra.mxu3 %v3686_v26  ;;  %v3778_v2 = vsub.f32 %v762_v58, %v3770_v1  ;;  %v1070_v9 = vsub.f32 %v526_v3, %v3802_v4  ;;  %v3402_v41 = vmov 0  }
  0x67   : > { %836 = vmatpush.msra.mxu1 %v835_v50  ;;  %888 = vmatmul.f32.vlgmr.msra.gmra.mxu2 %v3737_v51  ;;  %v1060_v61 = vsub.f32 %v3741_v53, %v1059_v57  ;;  %v1088_v27 = vsub.f32 %v523_v18, %v1028_v22  ;;  %vm1307_vm9 = vcmask 130048   ;;  %vm1497_vm10 = vcmask 64512  }
  0x68   : > { %v789_v59 = vsub.f32 %v3737_v51, %v3748_v55  ;;  %1019 = vmatpush.msrb.mxu2 %v3727_v47  ;;  %922 = vmatmul.f32.vlgmr.msra.gmra.mxu3 %v3748_v55  ;;  %v1071_v13 = vand.u32 4294901760, %v1070_v9 }
  0x69   : > { %842 = vmatpush.msra.mxu1 %v841_v40  ;;  %v1061_v0 = vand.u32 4294901760, %v1060_v61  ;;  %945 = vmatpush.msrb.mxu0 %v815_v25  ;;  %v1089_v17 = vand.u32 4294901760, %v1088_v27 }
  0x6a   : > { %v3767_v63 = vand.u32 4294901760, %v789_v59  ;;  %1021 = vmatpush.msrb.mxu2 %v3765_v62  ;;  %v1072_v20 = vsub.f32 %v1070_v9, %v1071_v13  ;;  %3256 = vset.pattern.permute.xlu1 %v3402_v41 }
  0x6b   : > { %848 = vmatpush.msra.mxu1 %v847_v60  ;;  %1062 = vmatpush.msrb.mxu3 %v1061_v0  ;;  %v1090_v31 = vsub.f32 %v1088_v27, %v1089_v17 }
  0x6c   : > { %791 = vmatmul.f32.vlgmr.msra.gmra.mxu0 %v3767_v63  ;;  %850 = vmatmul.f32.vlgmr.msra.gmra.mxu1 %v3724_v45 }
  0x6d   : > { %949 = vmatpush.msrb.mxu0 %v821_v23  ;;  %986 = vmatpush.msrb.mxu1 %v3652_v6  ;;  %v525_v6 = vld [vmem:[%s4196_s4 + $0x10] sm:$0xff]  ;;  %v1091_v33 = vand.u32 4294901760, %v1090_v31 }
  0x6e   : > { %1023 = vmatpush.msrb.mxu2 %v3802_v4  ;;  %v1024_v8 = vand.u32 4294901760, %v525_v6  ;;  %3257 = vset.pattern.permute.xlu2 %v3402_v41 }
  0x6f   : > { %893 = vmatmul.f32.gmra.mxu2 %v3778_v2  ;;  %953 = vmatpush.msrb.mxu0 %v827_v28 }
  0x70   : > { %988 = vmatpush.msrb.mxu1 %v3654_v7  ;;  %v1065_v7 = vand.u32 4294901760, %v1064_v5  ;;  %1025 = vmatpush.msrb.mxu2 %v1024_v8  ;;  %v1076_v15 = vsub.f32 %v525_v6, %v1024_v8 }
  0x71   : > { %957 = vmatpush.msrb.mxu0 %v833_v29  ;;  %3258 = vset.pattern.permute.xlu0 %v3402_v41 }
  0x72   : > { %990 = vmatpush.msrb.mxu1 %v3656_v10  ;;  %v796_v10 = vand.u32 4294901760, %v3778_v2  ;;  %v1066_v12 = vsub.f32 %v1064_v5, %v1065_v7  ;;  %v1077_v21 = vand.u32 4294901760, %v1076_v15 }
  0x73   : > { %961 = vmatpush.msrb.mxu0 %v839_v43  ;;  %v1273_v43 = vlaneseq }
  0x74   : > { %854 = vmatmul.f32.gmra.mxu1 %v3770_v1  ;;  %v797_v16 = vsub.f32 %v3778_v2, %v796_v10  ;;  %928 = vmatmul.f32.gmra.mxu3 %v796_v10  ;;  %v1067_v19 = vand.u32 4294901760, %v1066_v12 }
  0x75   : > { %992 = vmatpush.msrb.mxu1 %v3658_v11  ;;  %965 = vmatpush.msrb.mxu0 %v845_v46  ;;  %v524_v11 = vld [vmem:[%s4196_s4 + $0x8] sm:$0xff]  ;;  %v3843_v49 = vand.u32 127, %v1273_v43 }
  0x76   : > { %v1026_v14 = vand.u32 4294901760, %v524_v11  ;;  %v798_v25 = vand.u32 4294901760, %v797_v16  ;;  %1068 = vmatpush.msrb.mxu3 %v1067_v19  ;;  %1254 = vperm.xlu1 %3256, %v530_v42  }
  0x77   : > { %1114 = vmatpush.msra.mxu0 %v3741_v53  ;;  %994 = vmatpush.msrb.mxu1 %v3684_v24  ;;  %v1073_v24 = vand.u32 4294901760, %v1072_v20 }
  0x78   : > { %1027 = vmatpush.msrb.mxu2 %v1026_v14  ;;  %v1082_v23 = vsub.f32 %v524_v11, %v1026_v14  ;;  %799 = vmatmul.f32.gmra.mxu0 %v798_v25 }
  0x79   : > { %996 = vmatpush.msrb.mxu1 %v3686_v26  ;;  %1117 = vmatpush.msra.mxu0 %v1064_v5  ;;  %v1078_v26 = vsub.f32 %v1076_v15, %v1077_v21 }
  0x7a   : > { %1029 = vmatpush.msrb.mxu2 %v1028_v22  ;;  %v1083_v28 = vand.u32 4294901760, %v1082_v23  ;;  %1074 = vmatpush.msrb.mxu3 %v1073_v24  ;;  %v531_v24 = vld [vmem:[%s4199_s7] sm:$0xff] }
  0x7b   : > { %1152 = vmatpush.msra.mxu1 %v3727_v47  ;;  %1120 = vmatpush.msra.mxu0 %v1070_v9  ;;  %v1079_v29 = vand.u32 4294901760, %v1078_v26 }
  0x7c   : > { %998 = vmatmul.f32.vlgmr.msrb.gmra.mxu1 %v3724_v45  ;;  %1035 = vmatmul.f32.vlgmr.msrb.gmra.mxu2 %v3767_v63  ;;  %v1084_v30 = vsub.f32 %v1082_v23, %v1083_v28 }
  0x7d   : > { %1154 = vmatpush.msra.mxu1 %v3765_v62  ;;  %1123 = vmatpush.msra.mxu0 %v1076_v15 }
  0x7e   : > { %1189 = vmatpush.msra.mxu2 %v1059_v57  ;;  %1080 = vmatpush.msrb.mxu3 %v1079_v29  ;;  %v1085_v32 = vand.u32 4294901760, %v1084_v30  ;;  %v529_v57 = vld [vmem:[%s4197_s5] sm:$0xff] }
  0x7f   : > { %1156 = vmatpush.msra.mxu1 %v3802_v4  ;;  %1126 = vmatpush.msra.mxu0 %v1082_v23  ;;  %v536_v23 = vld [vmem:[%s4202_s10 + $0x8] sm:$0xff] }
  0x80   : > { %1193 = vmatpush.msra.mxu2 %v1065_v7  ;;  %1086 = vmatpush.msrb.mxu3 %v1085_v32 }
  0x81   : > { %1158 = vmatpush.msra.mxu1 %v1024_v8  ;;  %1129 = vmatpush.msra.mxu0 %v1088_v27  ;;  %v532_v27 = vld [vmem:[%s4200_s8] sm:$0xff] }
  0x82   : > { %1197 = vmatpush.msra.mxu2 %v1071_v13  ;;  %1092 = vmatpush.msrb.mxu3 %v1091_v33 }
  0x83   : > { %1160 = vmatpush.msra.mxu1 %v1026_v14  ;;  %967 = vmatmul.f32.vlgmr.msrb.gmra.mxu0 %v3724_v45 }
  0x84   : > { %1002 = vmatmul.f32.gmra.mxu1 %v3770_v1  ;;  %1201 = vmatpush.msra.mxu2 %v1077_v21 }
  0x85   : > { %1162 = vmatpush.msra.mxu1 %v1028_v22  ;;  %1094 = vmatmul.f32.vlgmr.msrb.gmra.mxu3 %v3724_v45 }
  0x86   : > { %1043 = vmatmul.f32.gmra.mxu2 %v798_v25  ;;  %1230 = vmatpush.msra.mxu3 %v3727_v47 }
  0x87   : > { %1205 = vmatpush.msra.mxu2 %v1083_v28  ;;  %1892 = vperm.xlu1 %3256, %v540_v48  }
  0x88   : > { %1232 = vmatpush.msra.mxu3 %v3765_v62  ;;  %v544_v62 = vld [vmem:[%s4206_s14 + $0x8] sm:$0xff]  ;;  %1472 = vperm.xlu2 %3257, %v531_v24  }
  0x89   : > { %1209 = vmatpush.msra.mxu2 %v1089_v17  ;;  %1478 = vperm.xlu0 %3258, %v532_v27  }
  0x8a   : > { %1234 = vmatpush.msra.mxu3 %v3802_v4 }
  0x8b   : > { %971 = vmatmul.f32.gmra.mxu0 %v3770_v1 }
  0x8c   : > { %1166 = vmatmul.f32.vlgmr.msra.gmra.mxu1 %v3748_v55  ;;  %1236 = vmatpush.msra.mxu3 %v1024_v8 }
  0x8d   : > { %1098 = vmatmul.f32.gmra.mxu3 %v3770_v1 }
  0x8e   : > { %1211 = vmatmul.f32.vlgmr.msra.gmra.mxu2 %v3724_v45  ;;  %1238 = vmatpush.msra.mxu3 %v1026_v14 }
  0x8f   : > { %2289 = vperm.xlu1 %3256, %v544_v62  }
  0x90   : > { %1240 = vmatpush.msra.mxu3 %v1028_v22 }
  0x93   : > { %1132 = vmatmul.f32.vlgmr.msra.gmra.mxu0 %v3737_v51 }
  0x94   : > { %1172 = vmatmul.f32.gmra.mxu1 %v796_v10 }
  0x95   : > { %1242 = vmatmul.f32.vlgmr.msra.gmra.mxu3 %v3724_v45 }
  0x96   : > { %1215 = vmatmul.f32.gmra.mxu2 %v3770_v1 }
  0x97   : > { %1494 = vperm.xlu1 %3256, %v536_v23  }
  0x9b   : > { %1137 = vmatmul.f32.gmra.mxu0 %v3778_v2  ;;  %v1309_v2 = vsel %vm1307_vm9, %v529_v57, 0  ;;  %vm2513_vm9 = vcmask 48128  }
  0x9c   : > { %v3859_v8 = vand.u32 4294901760, %v1309_v2 }
  0x9d   : > { %1246 = vmatmul.f32.gmra.mxu3 %v3770_v1 }
  0x9e   : > { %v3875_v26 = vsub.f32 %v1309_v2, %v3859_v8 }
  0xad   : > { %v594_v34 = vpop.xlane.xlu1 %593  ;;  %v588_v35 = vpop.xlane.xlu0 %587 }
  0xae   : > { %v567_v36 = vpop.xlane.xlu2 %566  ;;  %v618_v50 = vmul.f32 0.020833334, %v588_v35  ;;  %v620_v52 = vmul.f32 0.020833334, %v594_v34 }
  0xaf   : > { %v611_v63 = vmul.f32 0.020833334, %v567_v36 }
  0xb0   : > { %v1283_v53 = vperm.slane %v618_v50, %v3843_v49  ;;  %v1285_v61 = vperm.slane %v620_v52, %v3843_v49 }
  0xb1   : > { %v1276_v9 = vperm.slane %v611_v63, %v3843_v49 }
  0xb5   : > { %v591_v37 = vpop.xlane.xlu0 %590  ;;  %v564_v38 = vpop.xlane.xlu1 %563 }
  0xb6   : > { %v597_v39 = vpop.xlane.xlu2 %596  ;;  %v619_v46 = vmul.f32 0.020833334, %v591_v37  ;;  %v610_v0 = vmul.f32 0.020833334, %v564_v38  ;;  %v3889_v37 = vand.u32 4294901760, %v3875_v26 }
  0xb7   : > { %v621_v54 = vmul.f32 0.020833334, %v597_v39  ;;  %v539_v39 = vld [vmem:[%s4204_s12] sm:$0xff] }
  0xb8   : > { %v1284_v51 = vperm.slane %v619_v46, %v3843_v49  ;;  %v1275_v10 = vperm.slane %v610_v0, %v3843_v49  ;;  %v1332_v50 = vsub.f32 %v3875_v26, %v3889_v37  ;;  %1887 = vperm.xlu2 %3257, %v539_v39  }
  0xb9   : > { %v1286_v1 = vperm.slane %v621_v54, %v3843_v49 }
  0xba   : > { %v1298_v58 = vsel %vm738_vm1, %v1284_v51, %v1283_v53  ;;  %v1291_v28 = vsel %vm738_vm1, %v1276_v9, %v1275_v10 }
  0xbb   : > { %v1299_v3 = vsel %vm740_vm2, %v1285_v61, %v1298_v58  ;;  %v543_v58 = vld [vmem:[%s4206_s14] sm:$0xff] }
  0xbc   : > { %v1300_v11 = vsel %vm742_vm3, %v1286_v1, %v1299_v3  ;;  %v535_v61 = vld [vmem:[%s4202_s10] sm:$0xff] }
  0xbd   : > { %v570_v44 = vpop.xlane.xlu0 %569  ;;  %v600_v45 = vpop.xlane.xlu1 %599 }
  0xbe   : > { %v573_v47 = vpop.xlane.xlu2 %572  ;;  %v622_v40 = vmul.f32 0.020833334, %v600_v45  ;;  %v612_v4 = vmul.f32 0.020833334, %v570_v44 }
  0xbf   : > { %v613_v12 = vmul.f32 0.020833334, %v573_v47 }
  0xc0   : > { %v1287_v5 = vperm.slane %v622_v40, %v3843_v49  ;;  %v1277_v13 = vperm.slane %v612_v4, %v3843_v49  ;;  %2284 = vperm.xlu2 %3257, %v543_v58  }
  0xc1   : > { %v1278_v29 = vperm.slane %v613_v12, %v3843_v49 }
  0xc2   : > { %v1301_v14 = vsel %vm744_vm4, %v1287_v5, %v1300_v11  ;;  %v1292_v30 = vsel %vm740_vm2, %v1277_v13, %v1291_v28 }
  0xc3   : > { %v1293_v38 = vsel %vm742_vm3, %v1278_v29, %v1292_v30 }
  0xc5   : > { %v603_v55 = vpop.xlane.xlu0 %602  ;;  %v576_v56 = vpop.xlane.xlu1 %575 }
  0xc6   : > { %v623_v59 = vmul.f32 0.020833334, %v603_v55  ;;  %v606_v60 = vpop.xlane.xlu2 %605  ;;  %v614_v15 = vmul.f32 0.020833334, %v576_v56  ;;  %v3903_v56 = vand.u32 4294901760, %v1332_v50 }
  0xc7   : > { %v624_v6 = vmul.f32 0.020833334, %v606_v60 }
  0xc8   : > { %v1288_v7 = vperm.slane %v623_v59, %v3843_v49  ;;  %v1279_v31 = vperm.slane %v614_v15, %v3843_v49  ;;  %1489 = vperm.xlu2 %3257, %v535_v61  }
  0xc9   : > { %v1289_v16 = vperm.slane %v624_v6, %v3843_v49 }
  0xca   : > { %v1302_v20 = vsel %vm746_vm5, %v1288_v7, %v1301_v14  ;;  %v1294_v41 = vsel %vm744_vm4, %v1279_v31, %v1293_v38  ;;  %vm2520_vm4 = vcmask 1045504  }
  0xcb   : > { %v1303_v32 = vsel %vm748_vm6, %v1289_v16, %v1302_v20 }
  0xcd   : > { %v579_v18 = vpop.xlane.xlu0 %578 }
  0xce   : > { %v609_v19 = vpop.xlane.xlu1 %608  ;;  %v615_v21 = vmul.f32 0.020833334, %v579_v18  ;;  %v582_v25 = vpop.xlane.xlu2 %581 }
  0xcf   : > { %v625_v22 = vmul.f32 0.020833334, %v609_v19  ;;  %v616_v33 = vmul.f32 0.020833334, %v582_v25 }
  0xd0   : > { %v1280_v34 = vperm.slane %v615_v21, %v3843_v49 }
  0xd1   : > { %v1290_v17 = vperm.slane %v625_v22, %v3843_v49  ;;  %v1281_v42 = vperm.slane %v616_v33, %v3843_v49 }
  0xd2   : > { %v1295_v46 = vsel %vm746_vm5, %v1280_v34, %v1294_v41 }
  0xd3   : > { %v1304_v35 = vsel %vm750_vm7, %v1290_v17, %v1303_v32  ;;  %v1296_v52 = vsel %vm748_vm6, %v1281_v42, %v1295_v46 }
  0xd4   : > { %v1325_v36 = vand.u32 4294901760, %v1304_v35 }
  0xd5   : > { %v585_v44 = vpop.xlane.xlu0 %584 }
  0xd6   : > { %1326 = vmatpush.msrb.mxu0 %v1325_v36  ;;  %1410 = vmatpush.msrb.mxu3 %v1325_v36  ;;  %v1353_v45 = vsub.f32 %v1304_v35, %v1325_v36  ;;  %v617_v47 = vmul.f32 0.020833334, %v585_v44 }
  0xd8   : > { %1385 = vmatpush.msrb.mxu2 %v1353_v45  ;;  %v1354_v48 = vand.u32 4294901760, %v1353_v45  ;;  %v1282_v51 = vperm.slane %v617_v47, %v3843_v49 }
  0xda   : > { %v1355_v53 = vsub.f32 %v1353_v45, %v1354_v48  ;;  %v1297_v54 = vsel %vm750_vm7, %v1282_v51, %v1296_v52 }
  0xdb   : > { %v1327_v40 = vand.u32 4294901760, %v1297_v54 }
  0xdc   : > { %v1356_v55 = vand.u32 4294901760, %v1355_v53 }
  0xdd   : > { %1328 = vmatpush.msrb.mxu0 %v1327_v40  ;;  %v1359_v57 = vsub.f32 %v1297_v54, %v1327_v40  ;;  %1412 = vmatpush.msrb.mxu3 %v1327_v40  ;;  %v533_v54 = vld [vmem:[%s4201_s9] sm:$0xff] }
  0xde   : > { %1357 = vmatpush.msrb.mxu1 %v1356_v55  ;;  %1334 = vmatmul.f32.vlgmr.msrb.gmra.mxu0 %v3903_v56 }
  0xdf   : > { %1437 = vmatpush.msra.mxu0 %v1354_v48  ;;  %1388 = vmatpush.msrb.mxu2 %v1359_v57  ;;  %v1360_v49 = vand.u32 4294901760, %v1359_v57 }
  0xe0   : > { %1391 = vmatmul.f32.vlgmr.msrb.gmra.mxu2 %v3875_v26  ;;  %1416 = vmatmul.f32.vlgmr.msrb.gmra.mxu3 %v3889_v37 }
  0xe1   : > { %1441 = vmatpush.msra.mxu0 %v1360_v49  ;;  %v1361_v59 = vsub.f32 %v1359_v57, %v1360_v49  ;;  %v1499_v49 = vsel %vm1497_vm10, %v533_v54, 0 }
  0xe3   : > { %v1362_v60 = vand.u32 4294901760, %v1361_v59 }
  0xe5   : > { %1363 = vmatpush.msrb.mxu1 %v1362_v60 }
  0xe6   : > { %1365 = vmatmul.f32.vlgmr.msrb.gmra.mxu1 %v3859_v8  ;;  %1443 = vmatmul.f32.vlgmr.msra.gmra.mxu0 %v3859_v8 }
  0xe7   : > { %1462 = vmatpush.msra.mxu1 %v1325_v36 }
  0xe8   : > { %v3921_v44 = vpop.permute.xlu1 %1254 }
  0xe9   : > { %1464 = vmatpush.msra.mxu1 %v1327_v40  ;;  %v851_v62 = vpop.f32.mrf.mxu1  ;;  %v792_v0 = vpop.f32.mrf.mxu0 }
  0xea   : > { %v889_v63 = vpop.f32.mrf.mxu2  ;;  %v852_v35 = vadd.f32 %v851_v62, %v792_v0 }
  0xeb   : > { %v923_v2 = vpop.f32.mrf.mxu3 }
  0xec   : > { %v890_v38 = vadd.f32 %v889_v63, %v852_v35  ;;  %v3928_v63 = vand.u32 4294901760, %v1499_v49 }
  0xee   : > { %1466 = vmatmul.f32.vlgmr.msra.gmra.mxu1 %v3859_v8  ;;  %v924_v42 = vadd.f32 %v923_v2, %v890_v38  ;;  %v3930_v2 = vpop.permute.xlu2 %1472 }
  0xf1   : > { %v855_v1 = vpop.f32.mrf.mxu1 }
  0xf2   : > { %v894_v3 = vpop.f32.mrf.mxu2 }
  0xf5   : > { %v800_v4 = vpop.f32.mrf.mxu0 }
  0xf6   : > { %v856_v34 = vadd.f32 %v855_v1, %v800_v4  ;;  %v534_v4 = vld [vmem:[%s4201_s9 + $0x8] sm:$0xff] }
  0xf7   : > { %v929_v6 = vpop.f32.mrf.mxu3 }
  0xf8   : > { %v895_v36 = vadd.f32 %v894_v3, %v856_v34 }
  0xf9   : > { %v999_v5 = vpop.f32.mrf.mxu1 }
  0xfa   : > { %v930_v39 = vadd.f32 %v929_v6, %v895_v36 }
  0xfb   : > { %v3932_v3 = vpop.permute.xlu0 %1478 }
  0xff   : > { %v1036_v7 = vpop.f32.mrf.mxu2 }
 0x100   : > { %v968_v9 = vpop.f32.mrf.mxu0 }
 0x101   : > { %v1003_v10 = vpop.f32.mrf.mxu1  ;;  %v969_v47 = vadd.f32 %v968_v9, %v924_v42 }
 0x103   : > { %v1000_v55 = vadd.f32 %v999_v5, %v969_v47 }
 0x105   : > { %v1006_v61 = vmul.f32 0.03125, %v1000_v55 }
 0x107   : > { %v1735_v6 = vand.u32 4294901760, %v1006_v61 }
 0x108   : > { %v1095_v11 = vpop.f32.mrf.mxu3  ;;  %v972_v14 = vpop.f32.mrf.mxu0 }
 0x109   : > { %v1044_v12 = vpop.f32.mrf.mxu2  ;;  %v1096_v13 = vadd.f32 %v1095_v11, %v1036_v7  ;;  %v1167_v15 = vpop.f32.mrf.mxu1  ;;  %v973_v46 = vadd.f32 %v972_v14, %v930_v39  ;;  %v1522_v7 = vsub.f32 %v1499_v49, %v3928_v63 }
 0x10b   : > { %v1004_v52 = vadd.f32 %v1003_v10, %v973_v46  ;;  %v1502_v10 = vsel %vm1497_vm10, %v534_v4, 0  ;;  %v1523_v14 = vand.u32 4294901760, %v1522_v7 }
 0x10d   : > { %v1007_v59 = vmul.f32 0.03125, %v1004_v52 }
 0x10f   : > { %v1733_v1 = vand.u32 4294901760, %v1007_v59 }
 0x110   : > { %v1099_v16 = vpop.f32.mrf.mxu3  ;;  %v1133_v19 = vpop.f32.mrf.mxu0 }
 0x111   : > { %v1100_v18 = vadd.f32 %v1099_v16, %v1044_v12  ;;  %v1212_v20 = vpop.f32.mrf.mxu2  ;;  %v1134_v21 = vadd.f32 %v1133_v19, %v1096_v13  ;;  %v1173_v28 = vpop.f32.mrf.mxu1  ;;  %v1761_v11 = vsub.f32 %v1007_v59, %v1733_v1  ;;  %v1767_v13 = vsub.f32 %v1006_v61, %v1735_v6 }
 0x112   : > { %v3950_v42 = vpop.permute.xlu2 %1887 }
 0x113   : > { %v1168_v22 = vadd.f32 %v1167_v15, %v1134_v21  ;;  %v1529_v15 = vand.u32 4294901760, %v1502_v10  ;;  %v1768_v21 = vand.u32 4294901760, %v1767_v13 }
 0x115   : > { %v1213_v25 = vadd.f32 %v1212_v20, %v1168_v22  ;;  %v1524_v20 = vsub.f32 %v1522_v7, %v1523_v14  ;;  %v1530_v22 = vsub.f32 %v1502_v10, %v1529_v15 }
 0x118   : > { %v1243_v23 = vpop.f32.mrf.mxu3  ;;  %v1138_v27 = vpop.f32.mrf.mxu0 }
 0x119   : > { %v3917_v24 = vadd.f32 %v1243_v23, %v1213_v25  ;;  %v1139_v29 = vadd.f32 %v1138_v27, %v1100_v18  ;;  %v1216_v17 = vpop.f32.mrf.mxu2  ;;  %v1762_v18 = vand.u32 4294901760, %v1761_v11 }
 0x11a   : > { %v3954_v47 = vpop.permute.xlu2 %2284 }
 0x11b   : > { %v1174_v30 = vadd.f32 %v1173_v28, %v1139_v29  ;;  %v1763_v23 = vsub.f32 %v1761_v11, %v1762_v18  ;;  %v1525_v28 = vand.u32 4294901760, %v1524_v20  ;;  %v1769_v29 = vsub.f32 %v1767_v13, %v1768_v21 }
 0x11d   : > { %v1217_v31 = vadd.f32 %v1216_v17, %v1174_v30  ;;  %v1531_v17 = vand.u32 4294901760, %v1530_v22  ;;  %v1770_v34 = vand.u32 4294901760, %v1769_v29 }
 0x11f   : > { %v1532_v35 = vsub.f32 %v1530_v22, %v1531_v17 }
 0x120   : > { %v1247_v32 = vpop.f32.mrf.mxu3 }
 0x121   : > { %v3919_v33 = vadd.f32 %v1247_v32, %v1217_v31  ;;  %v1764_v31 = vand.u32 4294901760, %v1763_v23  ;;  %v1533_v39 = vand.u32 4294901760, %v1532_v35 }
 0x122   : > { %v1490_v54 = vpop.permute.xlu2 %1489 }
 0x15b   : > { %v1335_v41 = vpop.f32.mrf.mxu0 }
 0x15c   : > { %v1336_v45 = vadd.f32 %v1335_v41, %v3921_v44 }
 0x163   : > { %v1366_v48 = vpop.f32.mrf.mxu1  ;;  %v1392_v50 = vpop.f32.mrf.mxu2 }
 0x164   : > { %v1367_v51 = vadd.f32 %v1366_v48, %v1336_v45  ;;  %v1417_v53 = vpop.f32.mrf.mxu3  ;;  %v1444_v57 = vpop.f32.mrf.mxu0 }
 0x165   : > { %v3952_v45 = vpop.permute.xlu1 %1892 }
 0x166   : > { %v1393_v40 = vadd.f32 %v1392_v50, %v1367_v51 }
 0x168   : > { %v1418_v58 = vadd.f32 %v1417_v53, %v1393_v40 }
 0x16a   : > { %v1445_v60 = vadd.f32 %v1444_v57, %v1418_v58 }
 0x16b   : > { %v1467_v62 = vpop.f32.mrf.mxu1 }
 0x16c   : > { %v1468_v0 = vadd.f32 %v1467_v62, %v1445_v60  ;;  %v2888_v60 = vshrl.u32 %v1273_v43, 7 }
 0x16d   : > { %v3956_v52 = vpop.permute.xlu1 %2289 }
 0x16e   : > { %v1475_v5 = vmul.f32 %v3930_v2, %v1468_v0  ;;  %3259 = vset.pattern.permute.xlu0 %v2888_v60  ;;  %3260 = vset.pattern.permute.xlu2 %v2888_v60 }
 0x16f   : > { %3261 = vset.pattern.permute.xlu1 %v2888_v60 }
 0x170   : > { %v1481_v9 = vadd.f32 %v3932_v3, %v1475_v5 }
 0x172   : > { %v1482_v12 = vadd.f32 3.0, %v1481_v9 }
 0x174   : > { %v1483_v16 = vmax.f32 %v1482_v12, 0.0 }
 0x175   : > { %v1495_v62 = vpop.permute.xlu1 %1494 }
 0x176   : > { %v1484_v19 = vmin.f32 %v1483_v16, 6.0 }
 0x178   : > { %v1485_v25 = vmul.f32 %v1484_v19, %v1481_v9 }
 0x17a   : > { %v1486_v27 = vmul.f32 0.16666667, %v1485_v25 }
 0x17c   : > { %v1519_v30 = vand.u32 4294901760, %v1486_v27 }
 0x17e   : > { %1520 = vmatpush.msra.mxu2 %v1519_v30  ;;  %1613 = vmatpush.msrb.mxu1 %v1519_v30  ;;  %v1554_v32 = vsub.f32 %v1486_v27, %v1519_v30 }
 0x17f   : > { %1526 = vmatmul.f32.vlgmr.msra.gmra.mxu2 %v1525_v28  ;;  %1617 = vmatmul.f32.vlgmr.msrb.gmra.mxu1 %v1523_v14 }
 0x180   : > { %1765 = vmatpush.msra.mxu1 %v1764_v31  ;;  %1585 = vmatpush.msrb.mxu0 %v1554_v32  ;;  %v1555_v36 = vand.u32 4294901760, %v1554_v32 }
 0x181   : > { %1588 = vmatmul.f32.vlgmr.msrb.gmra.mxu0 %v1522_v7 }
 0x182   : > { %1771 = vmatpush.msra.mxu1 %v1770_v34  ;;  %1734 = vmatpush.msra.mxu0 %v1733_v1  ;;  %v1556_v38 = vsub.f32 %v1554_v32, %v1555_v36  ;;  %v1250_v32 = vmul.f32 0.041666668, %v3917_v24 }
 0x183   : > { %1645 = vmatpush.msrb.mxu2 %v1555_v36 }
 0x184   : > { %1818 = vmatpush.msrb.mxu1 %v1733_v1  ;;  %1736 = vmatpush.msra.mxu0 %v1735_v6  ;;  %v1557_v41 = vand.u32 4294901760, %v1556_v38 }
 0x185   : > { %1845 = vmatpush.msra.mxu2 %v1762_v18 }
 0x186   : > { %1793 = vmatpush.msrb.mxu0 %v1761_v11  ;;  %1820 = vmatpush.msrb.mxu1 %v1735_v6 }
 0x187   : > { %1849 = vmatpush.msra.mxu2 %v1768_v21  ;;  %1558 = vmatpush.msra.mxu3 %v1557_v41 }
 0x188   : > { %1796 = vmatpush.msrb.mxu0 %v1767_v13  ;;  %1534 = vmatmul.f32.gmra.mxu2 %v1533_v39  ;;  %v538_v39 = vld [vmem:[%s4203_s11 + $0x8] sm:$0xff] }
 0x189   : > { %1560 = vmatmul.f32.vlgmr.msra.gmra.mxu3 %v3928_v63  ;;  %1623 = vmatmul.f32.gmra.mxu1 %v1531_v17 }
 0x18a   : > { %1671 = vmatpush.msrb.mxu3 %v1519_v30  ;;  %1593 = vmatmul.f32.gmra.mxu0 %v1530_v22  ;;  %v537_v22 = vld [vmem:[%s4203_s11] sm:$0xff]  ;;  %v1251_v30 = vmul.f32 0.041666668, %v3919_v33 }
 0x18b   : > { %v1896_v17 = vsel %vm1497_vm10, %v537_v22, 0 }
 0x18c   : > { %1870 = vmatpush.msra.mxu3 %v1733_v1  ;;  %v3966_v35 = vand.u32 4294901760, %v1896_v17  ;;  %v3968_v38 = vand.u32 4294901760, %v1251_v30 }
 0x18e   : > { %1872 = vmatpush.msra.mxu3 %v1735_v6  ;;  %v1919_v24 = vsub.f32 %v1896_v17, %v3966_v35 }
 0x190   : > { %1647 = vmatmul.f32.vlgmr.msrb.gmra.mxu2 %v3928_v63 }
 0x191   : > { %1564 = vmatmul.f32.gmra.mxu3 %v1529_v15  ;;  %1773 = vmatmul.f32.vlgmr.msra.gmra.mxu1 %v3859_v8 }
 0x192   : > { %1742 = vmatmul.f32.vlgmr.msra.gmra.mxu0 %v3903_v56 }
 0x198   : > { %1651 = vmatmul.f32.gmra.mxu2 %v1529_v15 }
 0x199   : > { %1673 = vmatmul.f32.vlgmr.msrb.gmra.mxu3 %v3928_v63  ;;  %1824 = vmatmul.f32.vlgmr.msrb.gmra.mxu1 %v3889_v37 }
 0x19a   : > { %1799 = vmatmul.f32.vlgmr.msrb.gmra.mxu0 %v3875_v26 }
 0x1a0   : > { %1851 = vmatmul.f32.vlgmr.msra.gmra.mxu2 %v3859_v8 }
 0x1a1   : > { %1677 = vmatmul.f32.gmra.mxu3 %v1529_v15 }
 0x1a9   : > { %1874 = vmatmul.f32.vlgmr.msra.gmra.mxu3 %v3859_v8 }
 0x1fc   : > { %v1618_v50 = vpop.f32.mrf.mxu1 }
 0x1fe   : > { %v1589_v48 = vpop.f32.mrf.mxu0 }
 0x202   : > { %v1527_v46 = vpop.f32.mrf.mxu2 }
 0x203   : > { %v1528_v55 = vadd.f32 %v1527_v46, %v1490_v54  ;;  %v1899_v54 = vsel %vm1497_vm10, %v538_v39, 0 }
 0x204   : > { %v3988_v60 = vand.u32 4294901760, %v1899_v54 }
 0x206   : > { %v1624_v58 = vpop.f32.mrf.mxu1 }
 0x207   : > { %v1594_v40 = vpop.f32.mrf.mxu0 }
 0x20b   : > { %v1535_v51 = vpop.f32.mrf.mxu2 }
 0x20c   : > { %v1561_v53 = vpop.f32.mrf.mxu3  ;;  %v1536_v63 = vadd.f32 %v1535_v51, %v1495_v62 }
 0x20d   : > { %v1562_v57 = vadd.f32 %v1561_v53, %v1528_v55 }
 0x20e   : > { %v1774_v6 = vpop.f32.mrf.mxu1 }
 0x20f   : > { %v1590_v61 = vadd.f32 %v1589_v48, %v1562_v57  ;;  %v1743_v0 = vpop.f32.mrf.mxu0 }
 0x210   : > { %v1744_v12 = vadd.f32 %v1743_v0, %v3921_v44 }
 0x211   : > { %v1619_v4 = vadd.f32 %v1618_v50, %v1590_v61  ;;  %v3974_v50 = vand.u32 4294901760, %v1250_v32 }
 0x212   : > { %v1775_v15 = vadd.f32 %v1774_v6, %v1744_v12 }
 0x213   : > { %v1648_v59 = vpop.f32.mrf.mxu2 }
 0x214   : > { %v1565_v49 = vpop.f32.mrf.mxu3  ;;  %v1649_v5 = vadd.f32 %v1648_v59, %v1619_v4  ;;  %v1920_v59 = vand.u32 4294901760, %v1919_v24 }
 0x215   : > { %v1566_v1 = vadd.f32 %v1565_v49, %v1536_v63 }
 0x216   : > { %v1825_v21 = vpop.f32.mrf.mxu1 }
 0x217   : > { %v1595_v9 = vadd.f32 %v1594_v40, %v1566_v1  ;;  %v1800_v43 = vpop.f32.mrf.mxu0  ;;  %v3982_v40 = vsub.f32 %v1251_v30, %v3968_v38 }
 0x218   : > { %v1801_v19 = vadd.f32 %v1800_v43, %v1775_v15 }
 0x219   : > { %v1625_v14 = vadd.f32 %v1624_v58, %v1595_v9  ;;  %v3986_v58 = vsub.f32 %v1250_v32, %v3974_v50  ;;  %v2159_v0 = vand.u32 4294901760, %v3982_v40 }
 0x21a   : > { %v1826_v29 = vadd.f32 %v1825_v21, %v1801_v19 }
 0x21b   : > { %v1652_v11 = vpop.f32.mrf.mxu2  ;;  %v2165_v9 = vand.u32 4294901760, %v3986_v58 }
 0x21c   : > { %v1674_v7 = vpop.f32.mrf.mxu3  ;;  %v1653_v16 = vadd.f32 %v1652_v11, %v1625_v14  ;;  %v2160_v14 = vsub.f32 %v3982_v40, %v2159_v0 }
 0x21d   : > { %v1675_v10 = vadd.f32 %v1674_v7, %v1649_v5  ;;  %v1921_v7 = vsub.f32 %v1919_v24, %v1920_v59  ;;  %v2166_v22 = vsub.f32 %v3986_v58, %v2165_v9 }
 0x21f   : > { %v3192_v13 = vmul.f32 -1.442695, %v1675_v10  ;;  %v3995_v10 = vsub.f32 %v1899_v54, %v3988_v60  ;;  %v1922_v21 = vand.u32 4294901760, %v1921_v7  ;;  %v2167_v17 = vand.u32 4294901760, %v2166_v22 }
 0x221   : > { %3262 = vpow2.f32 %v3192_v13 }
 0x223   : > { %v1852_v28 = vpop.f32.mrf.mxu2 }
 0x224   : > { %v1678_v18 = vpop.f32.mrf.mxu3  ;;  %v1853_v31 = vadd.f32 %v1852_v28, %v1826_v29 }
 0x225   : > { %v1679_v20 = vadd.f32 %v1678_v18, %v1653_v16 }
 0x227   : > { %v3263_v25 = vpop.eup %3262  ;;  %v3193_v23 = vmul.f32 -1.442695, %v1679_v20 }
 0x228   : > { %v1687_v27 = vadd.f32 1.0, %v3263_v25 }
 0x229   : > { %3264 = vpow2.f32 %v3193_v23  ;;  %v1928_v23 = vand.u32 4294901760, %v3995_v10 }
 0x22a   : > { %3266 = vrcp.f32 %v1687_v27  ;;  %v1700_v49 = vand.u32 2147483648, %v1687_v27  ;;  %v1698_v62 = vand.u32 2147483647, %v1687_v27  ;;  %vm1694_vm12 = vweird.f32 %v1687_v27 }
 0x22c   : > { %v1875_v34 = vpop.f32.mrf.mxu3  ;;  %v1701_v6 = vor.u32 1.1754944e-38, %v1700_v49  ;;  %vm1699_vm14 = vcmp.eq.f32.partialorder %v1698_v62, 8.507059e+37 }
 0x22d   : > { %v1876_v36 = vadd.f32 %v1875_v34, %v1853_v31  ;;  %v1929_v31 = vsub.f32 %v3995_v10, %v1928_v23 }
 0x22f   : > { %v3265_v41 = vpop.eup %3264  ;;  %v1878_v46 = vmul.f32 %v1876_v36, %v3930_v2 }
 0x230   : > { %v3267_v48 = vpop.eup %3266  ;;  %v3976_v33 = vadd.f32 1.0, %v3265_v41 }
 0x231   : > { %v1690_v51 = vmul.f32 %v3267_v48, %v1687_v27  ;;  %v1879_v53 = vadd.f32 %v1878_v46, %v3932_v3  ;;  %vm1695_vm11 = vweird.f32 %v3267_v48  ;;  %v2161_v27 = vand.u32 4294901760, %v2160_v14 }
 0x232   : > { %3268 = vrcp.f32 %v3976_v33  ;;  %vm1696_vm13 = vmor %vm1694_vm12, %vm1695_vm11  ;;  %v1715_v39 = vand.u32 2147483648, %v3976_v33  ;;  %vm1709_vm1 = vweird.f32 %v3976_v33 }
 0x233   : > { %v1691_v55 = vsub.f32 1.0, %v1690_v51  ;;  %v1880_v57 = vadd.f32 3.0, %v1879_v53  ;;  %v1930_v51 = vand.u32 4294901760, %v1929_v31 }
 0x234   : > { %v1716_v54 = vor.u32 1.1754944e-38, %v1715_v39 }
 0x235   : > { %v1692_v61 = vmul.f32 %v3267_v48, %v1691_v55  ;;  %v1881_v63 = vmax.f32 %v1880_v57, 0.0 }
 0x237   : > { %v1693_v1 = vadd.f32 %v3267_v48, %v1692_v61  ;;  %v1882_v4 = vmin.f32 %v1881_v63, 6.0 }
 0x238   : > { %v3991_v5 = vpop.eup %3268 }
 0x239   : > { %v1697_v11 = vsel %vm1696_vm13, %v3267_v48, %v1693_v1  ;;  %v1705_v12 = vmul.f32 %v3991_v5, %v3976_v33  ;;  %v1883_v13 = vmul.f32 %v1882_v4, %v1879_v53  ;;  %vm1710_vm15 = vweird.f32 %v3991_v5 }
 0x23a   : > { %v4000_v43 = vsel %vm1699_vm14, %v1701_v6, %v1697_v11  ;;  %v1713_v48 = vand.u32 2147483647, %v3976_v33  ;;  %vm1711_vm2 = vmor %vm1709_vm1, %vm1710_vm15 }
 0x23b   : > { %v1706_v15 = vsub.f32 1.0, %v1705_v12  ;;  %v1884_v16 = vmul.f32 0.16666667, %v1883_v13  ;;  %v2900_v18 = vperm.slane %v4000_v43, 2  ;;  %v2893_v19 = vperm.slane %v4000_v43, 1 }
 0x23c   : > { %v2886_v20 = vperm.slane %v4000_v43, 0  ;;  %v2914_v34 = vperm.slane %v4000_v43, 4  ;;  %v2907_v41 = vperm.slane %v4000_v43, 3  ;;  %v2921_v46 = vperm.slane %v4000_v43, 5 }
 0x23d   : > { %2905 = vperm.xlu1 %3261, %v2900_v18   ;;  %2898 = vperm.xlu2 %3260, %v2893_v19   ;;  %v1916_v25 = vand.u32 4294901760, %v1884_v16  ;;  %v1707_v28 = vmul.f32 %v3991_v5, %v1706_v15  ;;  %vm1714_vm3 = vcmp.eq.f32.partialorder %v1713_v48, 8.507059e+37  ;;  %v2935_v55 = vperm.slane %v4000_v43, 7 }
 0x23e   : > { %2891 = vperm.xlu0 %3259, %v2886_v20  }
 0x23f   : > { %1917 = vmatpush.msra.mxu0 %v1916_v25  ;;  %2010 = vmatpush.msrb.mxu3 %v1916_v25  ;;  %v1951_v29 = vsub.f32 %v1884_v16, %v1916_v25  ;;  %v1708_v32 = vadd.f32 %v3991_v5, %v1707_v28  ;;  %v541_v28 = vld [vmem:[%s4205_s13] sm:$0xff] }
 0x240   : > { %1923 = vmatmul.f32.vlgmr.msra.gmra.mxu0 %v1922_v21  ;;  %2014 = vmatmul.f32.vlgmr.msrb.gmra.mxu3 %v1920_v59 }
 0x241   : > { %2162 = vmatpush.msra.mxu3 %v2161_v27  ;;  %1982 = vmatpush.msrb.mxu2 %v1951_v29  ;;  %v1952_v30 = vand.u32 4294901760, %v1951_v29  ;;  %v1712_v53 = vsel %vm1711_vm2, %v3991_v5, %v1708_v32 }
 0x242   : > { %1985 = vmatmul.f32.vlgmr.msrb.gmra.mxu2 %v1919_v24  ;;  %v1717_v33 = vsel %vm1714_vm3, %v1716_v54, %v1712_v53 }
 0x243   : > { %2168 = vmatpush.msra.mxu3 %v2167_v17  ;;  %2131 = vmatpush.msra.mxu2 %v3968_v38  ;;  %v1953_v36 = vsub.f32 %v1951_v29, %v1952_v30  ;;  %v2942_v57 = vperm.slane %v1717_v33, 0  ;;  %v2949_v49 = vperm.slane %v1717_v33, 1  ;;  %v2970_v59 = vperm.slane %v1717_v33, 4  ;;  %v515_v29 = vld [vmem:[%s4234_s1] sm:$0x3f] }
 0x244   : > { %2042 = vmatpush.msrb.mxu0 %v1952_v30  ;;  %v2991_v61 = vperm.slane %v1717_v33, 7 }
 0x245   : > { %2215 = vmatpush.msrb.mxu3 %v3968_v38  ;;  %2133 = vmatpush.msra.mxu2 %v3974_v50  ;;  %v1954_v24 = vand.u32 4294901760, %v1953_v36  ;;  %v2522_v36 = vsel %vm2520_vm4, %v515_v29, 0 }
 0x246   : > { %2242 = vmatpush.msra.mxu0 %v2159_v0  ;;  %2919 = vperm.xlu1 %3261, %v2914_v34   ;;  %v2293_v34 = vsel %vm1497_vm10, %v541_v28, 0  ;;  %v4055_v48 = vand.u32 4294901760, %v2522_v36 }
 0x247   : > { %2912 = vperm.xlu2 %3260, %v2907_v41   ;;  %2926 = vperm.xlu0 %3259, %v2921_v46   ;;  %v4053_v41 = vand.u32 4294901760, %v2293_v34 }
 0x248   : > { %2190 = vmatpush.msrb.mxu2 %v3982_v40  ;;  %2217 = vmatpush.msrb.mxu3 %v3974_v50  ;;  %v2928_v40 = vperm.slane %v4000_v43, 6 }
 0x249   : > { %2246 = vmatpush.msra.mxu0 %v2165_v9  ;;  %1955 = vmatpush.msra.mxu1 %v1954_v24 }
 0x24a   : > { %2193 = vmatpush.msrb.mxu2 %v3986_v58  ;;  %1931 = vmatmul.f32.gmra.mxu0 %v1930_v51  ;;  %v2956_v58 = vperm.slane %v1717_v33, 2  ;;  %v542_v51 = vld [vmem:[%s4205_s13 + $0x8] sm:$0xff] }
 0x24b   : > { %1957 = vmatmul.f32.vlgmr.msra.gmra.mxu1 %v3966_v35  ;;  %1990 = vmatmul.f32.gmra.mxu2 %v3995_v10 }
 0x24c   : > { %2068 = vmatpush.msrb.mxu1 %v1916_v25  ;;  %2020 = vmatmul.f32.gmra.mxu3 %v1928_v23 }
 0x24e   : > { %2267 = vmatpush.msra.mxu1 %v3968_v38  ;;  %2940 = vperm.xlu1 %3261, %v2935_v55   ;;  %v2963_v38 = vperm.slane %v1717_v33, 3 }
 0x24f   : > { %2933 = vperm.xlu2 %3260, %v2928_v40   ;;  %2947 = vperm.xlu0 %3259, %v2942_v57   ;;  %v4063_v57 = vsub.f32 %v2522_v36, %v4055_v48 }
 0x250   : > { %2269 = vmatpush.msra.mxu1 %v3974_v50  ;;  %v2977_v50 = vperm.slane %v1717_v33, 5 }
 0x252   : > { %2044 = vmatmul.f32.vlgmr.msrb.gmra.mxu0 %v3966_v35 }
 0x253   : > { %1961 = vmatmul.f32.gmra.mxu1 %v3988_v60  ;;  %2139 = vmatmul.f32.vlgmr.msra.gmra.mxu2 %v3903_v56  ;;  %v2984_v56 = vperm.slane %v1717_v33, 6  ;;  %v2316_v33 = vsub.f32 %v2293_v34, %v4053_v41 }
 0x254   : > { %2170 = vmatmul.f32.vlgmr.msra.gmra.mxu3 %v3859_v8 }
 0x256   : > { %2961 = vperm.xlu1 %3261, %v2956_v58  }
 0x257   : > { %2954 = vperm.xlu2 %3260, %v2949_v49   ;;  %2968 = vperm.xlu0 %3259, %v2963_v38   ;;  %v2296_v38 = vsel %vm1497_vm10, %v542_v51, 0 }
 0x25a   : > { %2048 = vmatmul.f32.gmra.mxu0 %v3988_v60 }
 0x25b   : > { %2070 = vmatmul.f32.vlgmr.msrb.gmra.mxu1 %v3966_v35  ;;  %2196 = vmatmul.f32.vlgmr.msrb.gmra.mxu2 %v3875_v26 }
 0x25c   : > { %2221 = vmatmul.f32.vlgmr.msrb.gmra.mxu3 %v3889_v37 }
 0x25e   : > { %2982 = vperm.xlu1 %3261, %v2977_v50  }
 0x25f   : > { %2975 = vperm.xlu2 %3260, %v2970_v59   ;;  %2989 = vperm.xlu0 %3259, %v2984_v56   ;;  %v2317_v56 = vand.u32 4294901760, %v2316_v33 }
 0x262   : > { %2248 = vmatmul.f32.vlgmr.msra.gmra.mxu0 %v3859_v8 }
 0x263   : > { %2074 = vmatmul.f32.gmra.mxu1 %v3988_v60 }
 0x267   : > { %2996 = vperm.xlu2 %3260, %v2991_v61   ;;  %v4067_v61 = vand.u32 4294901760, %v2296_v38 }
 0x26b   : > { %2271 = vmatmul.f32.vlgmr.msra.gmra.mxu1 %v3859_v8 }
 0x2bd   : > { %v1924_v62 = vpop.f32.mrf.mxu0 }
 0x2be   : > { %v1925_v37 = vadd.f32 %v1924_v62, %v3950_v42 }
 0x2c3   : > { %v2015_v35 = vpop.f32.mrf.mxu3 }
 0x2c5   : > { %v1986_v63 = vpop.f32.mrf.mxu2 }
 0x2c7   : > { %v1932_v26 = vpop.f32.mrf.mxu0 }
 0x2c8   : > { %v1958_v0 = vpop.f32.mrf.mxu1  ;;  %v1933_v10 = vadd.f32 %v1932_v26, %v3952_v45 }
 0x2c9   : > { %v1959_v1 = vadd.f32 %v1958_v0, %v1925_v37  ;;  %v2318_v37 = vsub.f32 %v2316_v33, %v2317_v56 }
 0x2cb   : > { %v1987_v7 = vadd.f32 %v1986_v63, %v1959_v1 }
 0x2cd   : > { %v2016_v60 = vadd.f32 %v2015_v35, %v1987_v7 }
 0x2ce   : > { %v1991_v4 = vpop.f32.mrf.mxu2 }
 0x2cf   : > { %v2021_v5 = vpop.f32.mrf.mxu3  ;;  %v2045_v9 = vpop.f32.mrf.mxu0 }
 0x2d0   : > { %v1962_v6 = vpop.f32.mrf.mxu1  ;;  %v2046_v13 = vadd.f32 %v2045_v9, %v2016_v60 }
 0x2d1   : > { %v1963_v11 = vadd.f32 %v1962_v6, %v1933_v10 }
 0x2d3   : > { %v1992_v43 = vadd.f32 %v1991_v4, %v1963_v11  ;;  %v2324_v4 = vsub.f32 %v2296_v38, %v4067_v61 }
 0x2d5   : > { %v2022_v19 = vadd.f32 %v2021_v5, %v1992_v43 }
 0x2d6   : > { %v2140_v12 = vpop.f32.mrf.mxu2 }
 0x2d7   : > { %v2171_v8 = vpop.f32.mrf.mxu3  ;;  %v2141_v16 = vadd.f32 %v2140_v12, %v3921_v44  ;;  %v2049_v42 = vpop.f32.mrf.mxu0 }
 0x2d8   : > { %v2071_v14 = vpop.f32.mrf.mxu1  ;;  %v2050_v22 = vadd.f32 %v2049_v42, %v2022_v19 }
 0x2d9   : > { %v2072_v15 = vadd.f32 %v2071_v14, %v2046_v13  ;;  %v2172_v20 = vadd.f32 %v2171_v8, %v2141_v16  ;;  %v2319_v13 = vand.u32 4294901760, %v2318_v37  ;;  %v2325_v8 = vand.u32 4294901760, %v2324_v4 }
 0x2db   : > { %v3194_v18 = vmul.f32 -1.442695, %v2072_v15 }
 0x2dd   : > { %3270 = vpow2.f32 %v3194_v18 }
 0x2de   : > { %v2197_v21 = vpop.f32.mrf.mxu2 }
 0x2df   : > { %v2198_v25 = vadd.f32 %v2197_v21, %v2172_v20  ;;  %v2222_v45 = vpop.f32.mrf.mxu3  ;;  %v2249_v32 = vpop.f32.mrf.mxu0  ;;  %v2326_v21 = vsub.f32 %v2324_v4, %v2325_v8 }
 0x2e0   : > { %v2075_v23 = vpop.f32.mrf.mxu1 }
 0x2e1   : > { %v2076_v27 = vadd.f32 %v2075_v23, %v2050_v22  ;;  %v2223_v30 = vadd.f32 %v2222_v45, %v2198_v25  ;;  %v2327_v29 = vand.u32 4294901760, %v2326_v21 }
 0x2e3   : > { %v3271_v44 = vpop.eup %3270  ;;  %v3195_v17 = vmul.f32 -1.442695, %v2076_v27  ;;  %v2250_v39 = vadd.f32 %v2249_v32, %v2223_v30 }
 0x2e4   : > { %v2084_v31 = vadd.f32 1.0, %v3271_v44 }
 0x2e5   : > { %3272 = vpow2.f32 %v3195_v17 }
 0x2e6   : > { %3274 = vrcp.f32 %v2084_v31  ;;  %v2097_v62 = vand.u32 2147483648, %v2084_v31  ;;  %v2095_v26 = vand.u32 2147483647, %v2084_v31  ;;  %vm2091_vm6 = vweird.f32 %v2084_v31 }
 0x2e8   : > { %v2272_v46 = vpop.f32.mrf.mxu1  ;;  %v2098_v6 = vor.u32 1.1754944e-38, %v2097_v62  ;;  %vm2096_vm8 = vcmp.eq.f32.partialorder %v2095_v26, 8.507059e+37 }
 0x2e9   : > { %v2273_v24 = vadd.f32 %v2272_v46, %v2250_v39 }
 0x2eb   : > { %v3273_v53 = vpop.eup %3272  ;;  %v2275_v54 = vmul.f32 %v2273_v24, %v3930_v2  ;;  %v2575_v2 = vand.u32 4294901760, %v4063_v57 }
 0x2ec   : > { %v3275_v55 = vpop.eup %3274  ;;  %v2085_v40 = vadd.f32 1.0, %v3273_v53 }
 0x2ed   : > { %v2087_v58 = vmul.f32 %v3275_v55, %v2084_v31  ;;  %v2276_v49 = vadd.f32 %v2275_v54, %v3932_v3  ;;  %vm2092_vm5 = vweird.f32 %v3275_v55  ;;  %v2576_v5 = vsub.f32 %v4063_v57, %v2575_v2 }
 0x2ee   : > { %3276 = vrcp.f32 %v2085_v40  ;;  %vm2093_vm7 = vmor %vm2091_vm6, %vm2092_vm5  ;;  %v2110_v43 = vand.u32 2147483647, %v2085_v40  ;;  %v2112_v15 = vand.u32 2147483648, %v2085_v40  ;;  %vm2106_vm12 = vweird.f32 %v2085_v40 }
 0x2ef   : > { %v2088_v50 = vsub.f32 1.0, %v2087_v58  ;;  %v2277_v59 = vadd.f32 3.0, %v2276_v49  ;;  %v2577_v14 = vand.u32 4294901760, %v2576_v5 }
 0x2f0   : > { %v2113_v25 = vor.u32 1.1754944e-38, %v2112_v15  ;;  %vm2111_vm14 = vcmp.eq.f32.partialorder %v2110_v43, 8.507059e+37 }
 0x2f1   : > { %v2278_v35 = vmax.f32 %v2277_v59, 0.0  ;;  %v2089_v63 = vmul.f32 %v3275_v55, %v2088_v50 }
 0x2f3   : > { %v2279_v0 = vmin.f32 %v2278_v35, 6.0  ;;  %v2090_v1 = vadd.f32 %v3275_v55, %v2089_v63 }
 0x2f4   : > { %v3277_v3 = vpop.eup %3276 }
 0x2f5   : > { %v2102_v7 = vmul.f32 %v3277_v3, %v2085_v40  ;;  %v2280_v9 = vmul.f32 %v2279_v0, %v2276_v49  ;;  %v2094_v10 = vsel %vm2093_vm7, %v3275_v55, %v2090_v1  ;;  %vm2107_vm11 = vweird.f32 %v3277_v3  ;;  %v516_v40 = vld [vmem:[%s4235_s2] sm:$0xff] }
 0x2f6   : > { %v2099_v60 = vsel %vm2096_vm8, %v2098_v6, %v2094_v10  ;;  %vm2108_vm13 = vmor %vm2106_vm12, %vm2107_vm11  ;;  %v2722_v58 = vand.u32 4294901760, %v516_v40 }
 0x2f7   : > { %v2103_v11 = vsub.f32 1.0, %v2102_v7  ;;  %v2281_v12 = vmul.f32 0.16666667, %v2280_v9  ;;  %v2515_v18 = vsel %vm2513_vm9, %v2099_v60, 0 }
 0x2f8   : > { %v2541_v22 = vand.u32 4294901760, %v2515_v18  ;;  %v2757_v59 = vsub.f32 %v516_v40, %v2722_v58 }
 0x2f9   : > { %v2313_v16 = vand.u32 4294901760, %v2281_v12  ;;  %v2104_v42 = vmul.f32 %v3277_v3, %v2103_v11 }
 0x2fa   : > { %v2542_v44 = vsub.f32 %v2515_v18, %v2541_v22 }
 0x2fb   : > { %2314 = vmatpush.msra.mxu2 %v2313_v16  ;;  %2407 = vmatpush.msrb.mxu1 %v2313_v16  ;;  %v2348_v19 = vsub.f32 %v2281_v12, %v2313_v16  ;;  %v2105_v20 = vadd.f32 %v3277_v3, %v2104_v42 }
 0x2fc   : > { %2320 = vmatmul.f32.vlgmr.msra.gmra.mxu2 %v2319_v13  ;;  %2411 = vmatmul.f32.vlgmr.msrb.gmra.mxu1 %v2317_v56  ;;  %v2543_v31 = vand.u32 4294901760, %v2542_v44 }
 0x2fd   : > { %2379 = vmatpush.msrb.mxu0 %v2348_v19  ;;  %v2349_v23 = vand.u32 4294901760, %v2348_v19  ;;  %2578 = vmatpush.msra.mxu1 %v2577_v14  ;;  %v2109_v45 = vsel %vm2108_vm13, %v3277_v3, %v2105_v20 }
 0x2fe   : > { %2382 = vmatmul.f32.vlgmr.msrb.gmra.mxu0 %v2316_v33  ;;  %v2114_v27 = vsel %vm2111_vm14, %v2113_v25, %v2109_v45  ;;  %v2544_v34 = vsub.f32 %v2542_v44, %v2543_v31 }
 0x2ff   : > { %2691 = vmatpush.msrb.mxu1 %v4055_v48  ;;  %2439 = vmatpush.msrb.mxu2 %v2349_v23  ;;  %v2350_v28 = vsub.f32 %v2348_v19, %v2349_v23  ;;  %v2518_v30 = vsel %vm2513_vm9, %v2114_v27, 0 }
 0x300   : > { %2540 = vmatpush.msra.mxu0 %v4055_v48  ;;  %v2549_v32 = vand.u32 4294901760, %v2518_v30  ;;  %v2545_v39 = vand.u32 4294901760, %v2544_v34 }
 0x301   : > { %2605 = vmatpush.msra.mxu2 %v4063_v57  ;;  %v2351_v17 = vand.u32 4294901760, %v2350_v28 }
 0x302   : > { %2665 = vmatpush.msrb.mxu0 %v2575_v2  ;;  %v2550_v36 = vsub.f32 %v2518_v30, %v2549_v32 }
 0x303   : > { %2352 = vmatpush.msra.mxu3 %v2351_v17 }
 0x304   : > { %2328 = vmatmul.f32.gmra.mxu2 %v2327_v29  ;;  %2354 = vmatmul.f32.vlgmr.msra.gmra.mxu3 %v4053_v41  ;;  %v2551_v46 = vand.u32 4294901760, %v2550_v36 }
 0x305   : > { %2417 = vmatmul.f32.gmra.mxu1 %v2325_v8  ;;  %2465 = vmatpush.msrb.mxu3 %v2313_v16 }
 0x306   : > { %2387 = vmatmul.f32.gmra.mxu0 %v2324_v4  ;;  %v2552_v24 = vsub.f32 %v2550_v36, %v2551_v46 }
 0x307   : > { %2633 = vmatpush.msra.mxu3 %v4055_v48 }
 0x308   : > { %v2553_v51 = vand.u32 4294901760, %v2552_v24 }
 0x30c   : > { %2358 = vmatmul.f32.gmra.mxu3 %v4067_v61  ;;  %2441 = vmatmul.f32.vlgmr.msrb.gmra.mxu2 %v4053_v41 }
 0x30d   : > { %2580 = vmatmul.f32.vlgmr.msra.gmra.mxu1 %v2541_v22  ;;  %2723 = vmatpush.msrb.mxu2 %v2722_v58 }
 0x30e   : > { %2546 = vmatmul.f32.vlgmr.msra.gmra.mxu0 %v2545_v39  ;;  %2816 = vmatpush.msra.mxu1 %v2722_v58 }
 0x30f   : > { %2788 = vmatpush.msra.mxu0 %v2757_v59 }
 0x314   : > { %2445 = vmatmul.f32.gmra.mxu2 %v4067_v61  ;;  %2467 = vmatmul.f32.vlgmr.msrb.gmra.mxu3 %v4053_v41 }
 0x315   : > { %2584 = vmatmul.f32.gmra.mxu1 %v2549_v32 }
 0x316   : > { %2554 = vmatmul.f32.gmra.mxu0 %v2553_v51 }
 0x31c   : > { %2471 = vmatmul.f32.gmra.mxu3 %v4067_v61  ;;  %2608 = vmatmul.f32.vlgmr.msra.gmra.mxu2 %v2542_v44  ;;  %v2758_v61 = vand.u32 4294901760, %v2757_v59 }
 0x31d   : > { %2693 = vmatmul.f32.vlgmr.msrb.gmra.mxu1 %v2541_v22 }
 0x31e   : > { %2667 = vmatmul.f32.vlgmr.msrb.gmra.mxu0 %v2541_v22  ;;  %v2759_v62 = vsub.f32 %v2757_v59, %v2758_v61  ;;  %2848 = vmatpush.msra.mxu2 %v2758_v61  ;;  %v2906_v61 = vpop.permute.xlu1 %2905 }
 0x320   : > { %v2760_v0 = vand.u32 4294901760, %v2759_v62 }
 0x322   : > { %2761 = vmatpush.msrb.mxu3 %v2760_v0 }
 0x324   : > { %2613 = vmatmul.f32.gmra.mxu2 %v2550_v36  ;;  %2637 = vmatmul.f32.vlgmr.msra.gmra.mxu3 %v2543_v31 }
 0x325   : > { %2697 = vmatmul.f32.gmra.mxu1 %v2549_v32  ;;  %2874 = vmatpush.msra.mxu3 %v2722_v58 }
 0x326   : > { %2671 = vmatmul.f32.gmra.mxu0 %v2549_v32  ;;  %v2920_v0 = vpop.permute.xlu1 %2919 }
 0x32c   : > { %2643 = vmatmul.f32.gmra.mxu3 %v2551_v46 }
 0x379   : > { %v2412_v38 = vpop.f32.mrf.mxu1 }
 0x37b   : > { %v2383_v41 = vpop.f32.mrf.mxu0 }
 0x37f   : > { %v2321_v48 = vpop.f32.mrf.mxu2 }
 0x380   : > { %v2322_v33 = vadd.f32 %v2321_v48, %v3954_v47 }
 0x382   : > { %v2418_v4 = vpop.f32.mrf.mxu1 }
 0x383   : > { %v2388_v63 = vpop.f32.mrf.mxu0 }
 0x387   : > { %v2329_v53 = vpop.f32.mrf.mxu2  ;;  %v2355_v54 = vpop.f32.mrf.mxu3 }
 0x388   : > { %v2356_v55 = vadd.f32 %v2355_v54, %v2322_v33  ;;  %v2330_v56 = vadd.f32 %v2329_v53, %v3956_v52 }
 0x38a   : > { %v2384_v49 = vadd.f32 %v2383_v41, %v2356_v55  ;;  %v2581_v41 = vpop.f32.mrf.mxu1 }
 0x38b   : > { %v2547_v55 = vpop.f32.mrf.mxu0 }
 0x38c   : > { %v2413_v47 = vadd.f32 %v2412_v38, %v2384_v49  ;;  %v2899_v38 = vpop.permute.xlu2 %2898 }
 0x38f   : > { %v2359_v57 = vpop.f32.mrf.mxu3  ;;  %v2442_v50 = vpop.f32.mrf.mxu2 }
 0x390   : > { %v2360_v2 = vadd.f32 %v2359_v57, %v2330_v56  ;;  %v2443_v35 = vadd.f32 %v2442_v50, %v2413_v47 }
 0x392   : > { %v2389_v37 = vadd.f32 %v2388_v63, %v2360_v2  ;;  %v2585_v49 = vpop.f32.mrf.mxu1  ;;  %v2892_v2 = vpop.permute.xlu0 %2891 }
 0x393   : > { %v2555_v57 = vpop.f32.mrf.mxu0 }
 0x394   : > { %v2419_v6 = vadd.f32 %v2418_v4, %v2389_v37  ;;  %v2913_v62 = vpop.permute.xlu2 %2912  ;;  %v2582_v4 = vadd.f32 %v2581_v41, %v2547_v55 }
 0x397   : > { %v2468_v26 = vpop.f32.mrf.mxu3  ;;  %v2446_v5 = vpop.f32.mrf.mxu2 }
 0x398   : > { %v2469_v1 = vadd.f32 %v2468_v26, %v2443_v35  ;;  %v2447_v52 = vadd.f32 %v2446_v5, %v2419_v6 }
 0x39a   : > { %v3196_v3 = vmul.f32 -1.442695, %v2469_v1  ;;  %v2694_v47 = vpop.f32.mrf.mxu1  ;;  %v2927_v37 = vpop.permute.xlu0 %2926 }
 0x39b   : > { %v2668_v59 = vpop.f32.mrf.mxu0 }
 0x39c   : > { %3278 = vpow2.f32 %v3196_v3  ;;  %v4093_v3 = vpop.permute.xlu2 %2933 }
 0x39f   : > { %v2472_v7 = vpop.f32.mrf.mxu3  ;;  %v2609_v58 = vpop.f32.mrf.mxu2 }
 0x3a0   : > { %v2473_v9 = vadd.f32 %v2472_v7, %v2447_v52  ;;  %v2610_v7 = vadd.f32 %v2609_v58, %v2582_v4 }
 0x3a2   : > { %v3279_v10 = vpop.eup %3278  ;;  %v3197_v60 = vmul.f32 -1.442695, %v2473_v9  ;;  %v4091_v1 = vpop.f32.mrf.mxu1 }
 0x3a3   : > { %v2481_v11 = vadd.f32 1.0, %v3279_v10  ;;  %v2672_v26 = vpop.f32.mrf.mxu0 }
 0x3a4   : > { %3280 = vpow2.f32 %v3197_v60 }
 0x3a5   : > { %3282 = vrcp.f32 %v2481_v11  ;;  %v2494_v15 = vand.u32 2147483648, %v2481_v11  ;;  %v2492_v18 = vand.u32 2147483647, %v2481_v11  ;;  %vm2488_vm1 = vweird.f32 %v2481_v11 }
 0x3a7   : > { %v2495_v20 = vor.u32 1.1754944e-38, %v2494_v15  ;;  %vm2493_vm3 = vcmp.eq.f32.partialorder %v2492_v18, 8.507059e+37  ;;  %v2638_v40 = vpop.f32.mrf.mxu3  ;;  %v2614_v56 = vpop.f32.mrf.mxu2 }
 0x3a8   : > { %v2639_v10 = vadd.f32 %v2638_v40, %v2610_v7  ;;  %v4099_v18 = vpop.permute.xlu2 %2954 }
 0x3aa   : > { %v3281_v12 = vpop.eup %3280 }
 0x3ab   : > { %v3283_v13 = vpop.eup %3282  ;;  %v2482_v8 = vadd.f32 1.0, %v3281_v12  ;;  %v2586_v12 = vadd.f32 %v2585_v49, %v2555_v57 }
 0x3ac   : > { %v2484_v14 = vmul.f32 %v3283_v13, %v2481_v11  ;;  %vm2489_vm15 = vweird.f32 %v3283_v13  ;;  %v4095_v11 = vpop.permute.xlu1 %2940 }
 0x3ad   : > { %3284 = vrcp.f32 %v2482_v8  ;;  %vm2490_vm2 = vmor %vm2488_vm1, %vm2489_vm15  ;;  %v2509_v28 = vand.u32 2147483648, %v2482_v8  ;;  %v2507_v44 = vand.u32 2147483647, %v2482_v8  ;;  %vm2503_vm5 = vweird.f32 %v2482_v8 }
 0x3ae   : > { %v2485_v43 = vsub.f32 1.0, %v2484_v14  ;;  %v2615_v15 = vadd.f32 %v2614_v56, %v2586_v12 }
 0x3af   : > { %v2510_v32 = vor.u32 1.1754944e-38, %v2509_v28  ;;  %vm2508_vm7 = vcmp.eq.f32.partialorder %v2507_v44, 8.507059e+37  ;;  %v2644_v50 = vpop.f32.mrf.mxu3 }
 0x3b0   : > { %v2486_v16 = vmul.f32 %v3283_v13, %v2485_v43  ;;  %v4097_v43 = vpop.permute.xlu0 %2947 }
 0x3b2   : > { %v2487_v42 = vadd.f32 %v3283_v13, %v2486_v16 }
 0x3b3   : > { %v3285_v19 = vpop.eup %3284 }
 0x3b4   : > { %v2499_v21 = vmul.f32 %v3285_v19, %v2482_v8  ;;  %v2491_v22 = vsel %vm2490_vm2, %v3283_v13, %v2487_v42  ;;  %vm2504_vm4 = vweird.f32 %v3285_v19  ;;  %v2669_v8 = vadd.f32 %v2668_v59, %v2639_v10  ;;  %v2962_v55 = vpop.permute.xlu1 %2961  ;;  %v3293_v10 = vld [vmem:[%s3577_s18 + $0x1c] sm:$0xf] }
 0x3b5   : > { %v2496_v25 = vsel %vm2493_vm3, %v2495_v20, %v2491_v22  ;;  %vm2505_vm6 = vmor %vm2503_vm5, %vm2504_vm4 }
 0x3b6   : > { %v2500_v23 = vsub.f32 1.0, %v2499_v21  ;;  %v2702_v45 = vsel %vm1497_vm10, %v2496_v25, 0  ;;  %v2695_v22 = vadd.f32 %v2694_v47, %v2669_v8 }
 0x3b7   : > { %v2724_v27 = vand.u32 4294901760, %v2702_v45 }
 0x3b8   : > { %v2501_v29 = vmul.f32 %v3285_v19, %v2500_v23  ;;  %v3286_v23 = vld [vmem:[%s3577_s18 + $0x4] sm:$0xf] }
 0x3b9   : > { %2763 = vmatmul.f32.vlgmr.msrb.gmra.mxu3 %v2724_v27  ;;  %v2725_v17 = vsub.f32 %v2702_v45, %v2724_v27  ;;  %v2999_v45 = vmul.f32 %v3286_v23, %v2899_v38  ;;  %v3298_v23 = vld [vmem:[%s3577_s18 + $0x2c] sm:$0xf] }
 0x3ba   : > { %v2502_v30 = vadd.f32 %v3285_v19, %v2501_v29  ;;  %v3288_v29 = vld [vmem:[%s3577_s18 + $0x8] sm:$0xf] }
 0x3bb   : > { %2791 = vmatmul.f32.vlgmr.msra.gmra.mxu0 %v2725_v17  ;;  %v2726_v31 = vand.u32 4294901760, %v2725_v17  ;;  %v3000_v44 = vmul.f32 %v3288_v29, %v2906_v61 }
 0x3bc   : > { %v2506_v34 = vsel %vm2505_vm6, %v3285_v19, %v2502_v30  ;;  %v2645_v19 = vadd.f32 %v2644_v50, %v2615_v15 }
 0x3bd   : > { %2820 = vmatmul.f32.vlgmr.msra.gmra.mxu1 %v2726_v31  ;;  %v2727_v36 = vsub.f32 %v2725_v17, %v2726_v31  ;;  %v2511_v39 = vsel %vm2508_vm7, %v2510_v32, %v2506_v34  ;;  %v3289_v17 = vld [vmem:[%s3577_s18] sm:$0xf]  ;;  %v3290_v34 = vld [vmem:[%s3577_s18 + $0x10] sm:$0xf] }
 0x3be   : > { %v2705_v46 = vsel %vm1497_vm10, %v2511_v39, 0  ;;  %v2998_v30 = vmul.f32 %v3289_v17, %v2892_v2  ;;  %v3291_v39 = vld [vmem:[%s3577_s18 + $0x14] sm:$0xf]  ;;  %v2969_v2 = vpop.permute.xlu0 %2968 }
 0x3bf   : > { %v2728_v24 = vand.u32 4294901760, %v2727_v36  ;;  %v2732_v51 = vand.u32 4294901760, %v2705_v46  ;;  %v3002_v36 = vmul.f32 %v3290_v34, %v2920_v0 }
 0x3c1   : > { %2729 = vmatmul.f32.vlgmr.msrb.gmra.mxu2 %v2728_v24  ;;  %2767 = vmatmul.f32.gmra.mxu3 %v2732_v51  ;;  %v2733_v48 = vsub.f32 %v2705_v46, %v2732_v51  ;;  %v3003_v46 = vmul.f32 %v3291_v39, %v2927_v37  ;;  %v2673_v24 = vadd.f32 %v2672_v26, %v2645_v19  ;;  %v2976_v26 = vpop.permute.xlu2 %2975  ;;  %v3295_v19 = vld [vmem:[%s3577_s18 + $0x30] sm:$0xf] }
 0x3c3   : > { %2796 = vmatmul.f32.gmra.mxu0 %v2733_v48  ;;  %v2734_v53 = vand.u32 4294901760, %v2733_v48 }
 0x3c5   : > { %2826 = vmatmul.f32.gmra.mxu1 %v2734_v53  ;;  %v2735_v54 = vsub.f32 %v2733_v48, %v2734_v53 }
 0x3c7   : > { %v2736_v33 = vand.u32 4294901760, %v2735_v54 }
 0x3c9   : > { %2737 = vmatmul.f32.gmra.mxu2 %v2736_v33  ;;  %2876 = vmatmul.f32.vlgmr.msra.gmra.mxu3 %v2724_v27 }
 0x3d1   : > { %2850 = vmatmul.f32.vlgmr.msra.gmra.mxu2 %v2724_v27  ;;  %2880 = vmatmul.f32.gmra.mxu3 %v2732_v51  ;;  %v3287_v27 = vld [vmem:[%s3577_s18 + $0xc] sm:$0xf] }
 0x3d2   : > { %v3001_v28 = vmul.f32 %v3287_v27, %v2913_v62  ;;  %v2983_v27 = vpop.permute.xlu1 %2982 }
 0x3d9   : > { %2854 = vmatmul.f32.gmra.mxu2 %v2732_v51 }
 0x438   : > { %v2792_v9 = vpop.f32.mrf.mxu0 }
 0x43a   : > { %v2821_v13 = vpop.f32.mrf.mxu1 }
 0x43c   : > { %v2764_v35 = vpop.f32.mrf.mxu3 }
 0x440   : > { %v2797_v31 = vpop.f32.mrf.mxu0 }
 0x442   : > { %v2827_v49 = vpop.f32.mrf.mxu1 }
 0x444   : > { %v2730_v63 = vpop.f32.mrf.mxu2  ;;  %v2768_v6 = vpop.f32.mrf.mxu3 }
 0x445   : > { %v2765_v5 = vadd.f32 %v2764_v35, %v2730_v63 }
 0x447   : > { %v2793_v60 = vadd.f32 %v2792_v9, %v2765_v5 }
 0x449   : > { %v2822_v14 = vadd.f32 %v2821_v13, %v2793_v60  ;;  %v3005_v60 = vmul.f32 %v3293_v10, %v4095_v11  ;;  %v2699_v13 = vadd.f32 %v4091_v1, %v2673_v24  ;;  %v3294_v11 = vld [vmem:[%s3577_s18 + $0x24] sm:$0xf]  ;;  %v3010_v1 = vmul.f32 %v3295_v19, %v2976_v26  ;;  %v2997_v24 = vpop.permute.xlu2 %2996 }
 0x44c   : > { %v2738_v52 = vpop.f32.mrf.mxu2  ;;  %v2877_v21 = vpop.f32.mrf.mxu3 }
 0x44d   : > { %v2769_v20 = vadd.f32 %v2768_v6, %v2738_v52  ;;  %v3292_v6 = vld [vmem:[%s3577_s18 + $0x18] sm:$0xf] }
 0x44e   : > { %v3004_v52 = vmul.f32 %v3292_v6, %v4093_v3 }
 0x44f   : > { %v2798_v51 = vadd.f32 %v2797_v31, %v2769_v20  ;;  %v3296_v20 = vld [vmem:[%s3577_s18 + $0x20] sm:$0xf] }
 0x451   : > { %v2828_v63 = vadd.f32 %v2827_v49, %v2798_v51  ;;  %v3299_v51 = vld [vmem:[%s3577_s18 + $0x34] sm:$0xf] }
 0x454   : > { %v2851_v16 = vpop.f32.mrf.mxu2  ;;  %v2881_v3 = vpop.f32.mrf.mxu3 }
 0x455   : > { %v2852_v42 = vadd.f32 %v2851_v16, %v2822_v14  ;;  %v3007_v16 = vmul.f32 %v3294_v11, %v4099_v18 }
 0x457   : > { %v2878_v25 = vadd.f32 %v2877_v21, %v2852_v42  ;;  %v3006_v21 = vmul.f32 %v3296_v20, %v4097_v43 }
 0x459   : > { %v2884_v32 = vmul.f32 %v2878_v25, %v2695_v22  ;;  %v3297_v22 = vld [vmem:[%s3577_s18 + $0x28] sm:$0xf] }
 0x45a   : > { %v3008_v25 = vmul.f32 %v3297_v22, %v2962_v55 }
 0x45b   : > { %v3016_v48 = vrot.slane %v2884_v32, 1  ;;  %v3017_v53 = vrot.slane %v2884_v32, 2  ;;  %v3018_v54 = vrot.slane %v2884_v32, 3  ;;  %v3019_v33 = vrot.slane %v2884_v32, 4 }
 0x45c   : > { %v3020_v41 = vrot.slane %v2884_v32, 5  ;;  %v3021_v40 = vrot.slane %v2884_v32, 6  ;;  %v3022_v57 = vrot.slane %v2884_v32, 7  ;;  %v3030_v58 = vperm.slane %v2884_v32, 0  ;;  %v2855_v61 = vpop.f32.mrf.mxu2  ;;  %v2990_v32 = vpop.permute.xlu0 %2989 }
 0x45d   : > { %v3031_v38 = vperm.slane %v3016_v48, 0  ;;  %v3032_v50 = vperm.slane %v3017_v53, 0  ;;  %v3033_v59 = vperm.slane %v3018_v54, 0  ;;  %v3034_v56 = vperm.slane %v3019_v33, 0 }
 0x45e   : > { %v3035_v47 = vperm.slane %v3020_v41, 0  ;;  %v3036_v62 = vperm.slane %v3021_v40, 0  ;;  %v3062_v35 = vmul.f32 %v3030_v58, %v2998_v30  ;;  %v3037_v0 = vperm.slane %v3022_v57, 0  ;;  %v3300_v58 = vld [vmem:[%s3577_s18 + $0x38] sm:$0xf] }
 0x45f   : > { %v3063_v37 = vmul.f32 %v3031_v38, %v2999_v45  ;;  %v3064_v4 = vmul.f32 %v3032_v50, %v3000_v44  ;;  %v3065_v5 = vmul.f32 %v3033_v59, %v3001_v28  ;;  %v3066_v7 = vmul.f32 %v3034_v56, %v3002_v36  ;;  %v3301_v50 = vld [vmem:[%s3577_s18 + $0x3c] sm:$0xf]  ;;  %s3095_s18 = scalar_lea.sflag [#allocation4], %s3571_s23 }
 0x460   : > { %3078 = vst.msk [vmem:[%s4111_s15] sm:$0xf] %vm561_vm0, %v3062_v35  ;;  %v2856_v9 = vadd.f32 %v2855_v61, %v2828_v63  ;;  %v3067_v12 = vmul.f32 %v3035_v47, %v3003_v46  ;;  %v3068_v8 = vmul.f32 %v3036_v62, %v3004_v52  ;;  %v3069_v15 = vmul.f32 %v3037_v0, %v3005_v60 }
 0x461   : > { %3079 = vst.msk [vmem:[%s4111_s15 + $0x4] sm:$0xf] %vm561_vm0, %v3063_v37  ;;  %v3009_v45 = vmul.f32 %v3298_v23, %v2969_v2  ;;  %v3011_v48 = vmul.f32 %v3299_v51, %v2983_v27  ;;  %v3012_v49 = vmul.f32 %v3300_v58, %v2990_v32  ;;  %v3013_v59 = vmul.f32 %v3301_v50, %v2997_v24 }
 0x462   : > { %3080 = vst.msk [vmem:[%s4111_s15 + $0x8] sm:$0xf] %vm561_vm0, %v3064_v4  ;;  %v2882_v14 = vadd.f32 %v2881_v3, %v2856_v9 }
 0x463   : > { %3081 = vst.msk [vmem:[%s4111_s15 + $0xc] sm:$0xf] %vm561_vm0, %v3065_v5 }
 0x464   : > { %3082 = vst.msk [vmem:[%s4111_s15 + $0x10] sm:$0xf] %vm561_vm0, %v3066_v7  ;;  %v2885_v42 = vmul.f32 %v2882_v14, %v2699_v13 }
 0x465   : > { %3083 = vst.msk [vmem:[%s4111_s15 + $0x14] sm:$0xf] %vm561_vm0, %v3067_v12 }
 0x466   : > { %3084 = vst.msk [vmem:[%s4111_s15 + $0x18] sm:$0xf] %vm561_vm0, %v3068_v8  ;;  %v3023_v18 = vrot.slane %v2885_v42, 1  ;;  %v3024_v28 = vrot.slane %v2885_v42, 2  ;;  %v3025_v29 = vrot.slane %v2885_v42, 3  ;;  %v3026_v44 = vrot.slane %v2885_v42, 4 }
 0x467   : > { %3085 = vst.msk [vmem:[%s4111_s15 + $0x1c] sm:$0xf] %vm561_vm0, %v3069_v15  ;;  %v3027_v17 = vrot.slane %v2885_v42, 5  ;;  %v3028_v30 = vrot.slane %v2885_v42, 6  ;;  %v3029_v43 = vrot.slane %v2885_v42, 7  ;;  %v3038_v31 = vperm.slane %v2885_v42, 0 }
 0x468   : > { %v3039_v34 = vperm.slane %v3023_v18, 0  ;;  %v3040_v36 = vperm.slane %v3024_v28, 0  ;;  %v3041_v39 = vperm.slane %v3025_v29, 0  ;;  %v3042_v46 = vperm.slane %v3026_v44, 0 }
 0x469   : > { %v3043_v53 = vperm.slane %v3027_v17, 0  ;;  %v3044_v54 = vperm.slane %v3028_v30, 0  ;;  %v3070_v33 = vmul.f32 %v3038_v31, %v3006_v21  ;;  %v3045_v55 = vperm.slane %v3029_v43, 0 }
 0x46a   : > { %v3071_v41 = vmul.f32 %v3039_v34, %v3007_v16  ;;  %v3072_v40 = vmul.f32 %v3040_v36, %v3008_v25  ;;  %v3073_v57 = vmul.f32 %v3041_v39, %v3009_v45  ;;  %v3074_v38 = vmul.f32 %v3042_v46, %v3010_v1 }
 0x46b   : > { %3086 = vst.msk [vmem:[%s4111_s15 + $0x20] sm:$0xf] %vm561_vm0, %v3070_v33  ;;  %v3075_v56 = vmul.f32 %v3043_v53, %v3011_v48  ;;  %v3076_v61 = vmul.f32 %v3044_v54, %v3012_v49  ;;  %v3077_v2 = vmul.f32 %v3045_v55, %v3013_v59 }
 0x46c   : > { %3087 = vst.msk [vmem:[%s4111_s15 + $0x24] sm:$0xf] %vm561_vm0, %v3071_v41 }
 0x46d   : > { %3088 = vst.msk [vmem:[%s4111_s15 + $0x28] sm:$0xf] %vm561_vm0, %v3072_v40 }
 0x46e   : > { %3089 = vst.msk [vmem:[%s4111_s15 + $0x2c] sm:$0xf] %vm561_vm0, %v3073_v57 }
 0x46f   : > { %3090 = vst.msk [vmem:[%s4111_s15 + $0x30] sm:$0xf] %vm561_vm0, %v3074_v38 }
 0x470   : > { %3091 = vst.msk [vmem:[%s4111_s15 + $0x34] sm:$0xf] %vm561_vm0, %v3075_v56 }
 0x471   : > { %3092 = vst.msk [vmem:[%s4111_s15 + $0x38] sm:$0xf] %vm561_vm0, %v3076_v61 }
 0x472   : > { %3093 = vst.msk [vmem:[%s4111_s15 + $0x3c] sm:$0xf] %vm561_vm0, %v3077_v2 }
 0x473   : > { %3359 = shalt.err (!%p3356_p4)
}
 0x474   : > { %s3403_s23 = smov 64   ;;  %s3404_s15 = smov 4  }
 0x475   : > { %3207 = dma.vmem_to_hbm [thread:$0]  (%p3535_p11), %s3108_s28, 1024, %s3110_s25, %s3095_s18, %s3403_s23, %s3403_s23, %s3404_s15  }
 0x476 PF: > { %s4239_s27 = sld [smem:[#allocation8_spill]]  ;;  %p4241_p7 = scmp.ge.s32.totalorder %s3398_s21, 2 }
 0x478   : > { %p3214_p5 = pnand %p4241_p7, %p3539_p12 }
 0x47a   : > { %p3215_p8 = pneg %p3214_p5 }
 0x47c   : > { %s3124_s1 = sand.u32 1, %s4239_s27  }
 0x47d   : > { %s3125_s2 = scalar_lea.sflag [#allocation4], %s3124_s1 }
 0x47e   : > { %3381 = dma.done.wait (%p3215_p8), %s3125_s2, 1024  }
 0x47f   : > { %3383 = vsyncadd (%p3215_p8), %s3125_s2, 4294966272  ;;  %s4242_s21 = sld [smem:[#allocation11_spill]]  ;;  %s4245_s18 = smov %s3390_s19 }
 0x480   : > { %s4243_s26 = sld [smem:[#allocation9_spill]] }
 0x481   : > { %s4244_s20 = sld [smem:[#allocation12_spill]] }
 0x485   : > { %p28_p10 = scmp.ge.s32.totalorder %s4242_s21, 4  }
 0x486   : > { %s4246_s19 = smov %s4243_s26 }
 0x487   :  { %30 = sbr.rel (!%p28_p10) target bundleno = 10 (0xa), region = 125 }
 0x48c   :  { %3131 = vsyncpa [#allocation3], 1 }
 0x48d   :  { %3133 = vsyncpa [#allocation3 + $0x1], 1 }
 0x48e   :  { %3134 = vsyncpa [#allocation4], 1 }
 0x48f   :  { %3136 = vsyncpa [#allocation4 + $0x1], 1 }

</bundles_post_ra>
